<compile_context>
chip_gen: v5e
topology: v5e:2x2
jax: 0.10.0
libtpu: 0.0.40
codegen_flags: <defaults>
</compile_context>

<pallas_src>
import functools
import math

import jax
import jax.numpy as jnp
from jax.experimental import pallas as pl
from jax.experimental.pallas import tpu as pltpu


def _round_up(x, m):
    return ((x + m - 1) // m) * m


def _lstm_block_kernel(x_ref, wih_ref, whh_ref, b_ref, wout_ref, bout_ref,
                       out_ref, h_state, c_state, gx_buf, h_buf,
                       *, hidden_pad, batch_pad, time_block, unroll):
    """One grid step == `time_block` LSTM steps + one batched output proj."""
    Hp = hidden_pad
    Bp = batch_pad

    # hidden0 is None in the reference forward -> zero initial state.
    @pl.when(pl.program_id(0) == 0)
    def _():
        h_state[...] = jnp.zeros_like(h_state)
        c_state[...] = jnp.zeros_like(c_state)

    # ---- (1) Hoisted input projection for the whole time block ------------
    # One (Tc*Bp, D) x (D, 4Hp) MXU matmul instead of Tc tiny per-step ones.
    gx_buf[...] = (
        jnp.dot(x_ref[...], wih_ref[...], preferred_element_type=jnp.float32)
        + b_ref[...])

    # ---- (2) Serial recurrence: only h_prev @ W_hh^T on the critical path --
    def step(s, carry):
        h_prev, c_prev = carry
        row = pl.multiple_of(s * Bp, 8)          # Bp is a multiple of 8
        gates = (gx_buf[pl.ds(row, Bp), :]
                 + jnp.dot(h_prev, whh_ref[...],
                           preferred_element_type=jnp.float32))
        # Gate slices land on full 128-lane boundaries (Hp % 128 == 0).
        i_g = jax.nn.sigmoid(gates[:, 0 * Hp:1 * Hp])
        f_g = jax.nn.sigmoid(gates[:, 1 * Hp:2 * Hp])
        g_g = jnp.tanh(gates[:, 2 * Hp:3 * Hp])
        o_g = jax.nn.sigmoid(gates[:, 3 * Hp:4 * Hp])
        c_new = f_g * c_prev + i_g * g_g
        h_new = o_g * jnp.tanh(c_new)
        h_buf[pl.ds(row, Bp), :] = h_new
        return (h_new, c_new)

    h_last, c_last = jax.lax.fori_loop(
        0, time_block, step, (h_state[...], c_state[...]), unroll=unroll)
    h_state[...] = h_last
    c_state[...] = c_last

    # ---- (3) Batched output projection + single slab writeback ------------
    y = (jnp.dot(h_buf[...], wout_ref[...], preferred_element_type=jnp.float32)
         + bout_ref[...])
    out_ref[...] = y.astype(out_ref.dtype)


def predictor_forward(inputs, params, *, time_block=32):
    """inputs: (T, B, D) float32.  Returns (T, B, O) float32."""
    T, B, D = inputs.shape
    w_ih, w_hh = params["w_ih"], params["w_hh"]
    b_ih, b_hh = params["b_ih"], params["b_hh"]
    w_out, b_out = params["w_out"], params["b_out"]
    H = w_hh.shape[1]
    O = w_out.shape[0]

    LANE, SUB = 128, 8
    Hp = _round_up(H, LANE)              # per-gate hidden padding (lane dense)
    Bp = _round_up(B, SUB)               # batch padding (sublane aligned)
    Tc = max(1, min(time_block, T))      # time steps per grid iteration
    Tp = _round_up(T, Tc)
    num_blocks = Tp // Tc
    f32 = jnp.float32

    # ---- weight preprocessing (glue, outside the kernel) -------------------
    # Zero padding of the hidden dim is exact: padded gates are sigmoid(0)/
    # tanh(0), so padded c stays 0 and padded h stays 0; padded W rows/cols
    # are 0 and never contribute.
    # NOTE: for large H on v7x, cast these to bfloat16 here (keep f32 accum).
    def pad_gates(w, in_pad):
        # w: (4H, X), rows grouped [i; f; g; o] -> (4*Hp, X + in_pad) padded.
        X = w.shape[1]
        w4 = w.reshape(4, H, X).astype(f32)
        w4 = jnp.pad(w4, ((0, 0), (0, Hp - H), (0, in_pad)))
        return w4.reshape(4 * Hp, X + in_pad)

    wih_t = jnp.transpose(pad_gates(w_ih, 0))                    # (D, 4Hp)
    whh_t = jnp.transpose(pad_gates(w_hh, Hp - H))               # (Hp, 4Hp)
    bias = jnp.pad((b_ih + b_hh).astype(f32).reshape(4, H),
                   ((0, 0), (0, Hp - H))).reshape(1, 4 * Hp)     # (1, 4Hp)
    wout_t = jnp.transpose(
        jnp.pad(w_out.astype(f32), ((0, 0), (0, Hp - H))))       # (Hp, O)
    bout = b_out.astype(f32).reshape(1, O)                       # (1, O)

    # Pad batch/time with zeros; extra rows/steps are computed and discarded.
    x = jnp.pad(inputs.astype(f32), ((0, Tp - T), (0, Bp - B), (0, 0)))
    x2 = x.reshape(Tp * Bp, D)   # 2-D so every in-kernel matmul is plain MXU

    kernel = functools.partial(
        _lstm_block_kernel, hidden_pad=Hp, batch_pad=Bp,
        time_block=Tc, unroll=(Tc <= 32))

    grid_spec = pltpu.PrefetchScalarGridSpec(
        num_scalar_prefetch=0,
        grid=(num_blocks,),
        in_specs=[
            pl.BlockSpec((Tc * Bp, D), lambda i: (i, 0)),        # x block
            pl.BlockSpec((D, 4 * Hp), lambda i: (0, 0)),         # W_ih^T
            pl.BlockSpec((Hp, 4 * Hp), lambda i: (0, 0)),        # W_hh^T
            pl.BlockSpec((1, 4 * Hp), lambda i: (0, 0)),         # bias
            pl.BlockSpec((Hp, O), lambda i: (0, 0)),             # W_out^T
            pl.BlockSpec((1, O), lambda i: (0, 0)),              # b_out
        ],
        out_specs=pl.BlockSpec((Tc * Bp, O), lambda i: (i, 0)),
        scratch_shapes=[
            pltpu.VMEM((Bp, Hp), f32),             # h state (persists)
            pltpu.VMEM((Bp, Hp), f32),             # c state (persists)
            pltpu.VMEM((Tc * Bp, 4 * Hp), f32),    # hoisted x@W_ih gates
            pltpu.VMEM((Tc * Bp, Hp), f32),        # per-block hidden states
        ],
    )

    # Rough resident-VMEM estimate; raise the scoped limit only if the default
    # (16/32 MiB) would be too small (matters for large H/D configs).
    est_bytes = 4 * (
        2 * (D * 4 * Hp + Hp * 4 * Hp + 4 * Hp + Hp * O + O)     # weights x2
        + 2 * (Tc * Bp * D + Tc * Bp * O)                        # x / out x2
        + Tc * Bp * 4 * Hp + Tc * Bp * Hp + 2 * Bp * Hp)         # scratch
    vmem_limit = None
    if est_bytes > 16 * 1024 * 1024:
        vmem_limit = min(est_bytes + (8 << 20), 100 << 20)

    out2 = pl.pallas_call(
        kernel,
        out_shape=jax.ShapeDtypeStruct((Tp * Bp, O), f32),
        grid_spec=grid_spec,
        compiler_params=pltpu.CompilerParams(
            dimension_semantics=("arbitrary",),    # sequential recurrence
            vmem_limit_bytes=vmem_limit),
    )(x2, wih_t, whh_t, bias, wout_t, bout)

    return out2.reshape(Tp, Bp, O)[:T, :B, :]


def predictor_reference(inputs, params):
    """Pure-JAX reference (mirrors PyTorch nn.LSTM + nn.Linear)."""
    w_ih, w_hh, b_ih, b_hh, w_out, b_out = (
        params["w_ih"], params["w_hh"], params["b_ih"], params["b_hh"],
        params["w_out"], params["b_out"])
    T, B, D = inputs.shape
    H = w_hh.shape[1]

    def step(carry, x_t):
        h, c = carry
        gates = x_t @ w_ih.T + h @ w_hh.T + b_ih + b_hh
        i = jax.nn.sigmoid(gates[:, 0 * H:1 * H])
        f = jax.nn.sigmoid(gates[:, 1 * H:2 * H])
        g = jnp.tanh(gates[:, 2 * H:3 * H])
        o = jax.nn.sigmoid(gates[:, 3 * H:4 * H])
        c_new = f * c + i * g
        h_new = o * jnp.tanh(c_new)
        return (h_new, c_new), h_new

    init = (jnp.zeros((B, H), jnp.float32), jnp.zeros((B, H), jnp.float32))
    _, hs = jax.lax.scan(step, init, inputs)
    return hs @ w_out.T + b_out


def init_params(key, input_dim, hidden_dim, output_dim):
    """Deterministic init mimicking PyTorch's U(-1/sqrt(H), 1/sqrt(H))."""
    ks = jax.random.split(key, 6)
    s = 1.0 / math.sqrt(hidden_dim)
    u = lambda k, shape: jax.random.uniform(k, shape, jnp.float32, -s, s)
    return {
        "w_ih": u(ks[0], (4 * hidden_dim, input_dim)),
        "w_hh": u(ks[1], (4 * hidden_dim, hidden_dim)),
        "b_ih": u(ks[2], (4 * hidden_dim,)),
        "b_hh": u(ks[3], (4 * hidden_dim,)),
        "w_out": u(ks[4], (output_dim, hidden_dim)),
        "b_out": u(ks[5], (output_dim,)),
    }


if __name__ == "__main__":
    SEQ, BATCH, IN_DIM, HIDDEN, OUT_DIM = 8, 4, 16, 32, 8

    key = jax.random.PRNGKey(0)
    k_in, k_par = jax.random.split(key)
    inputs = jax.random.normal(k_in, (SEQ, BATCH, IN_DIM), jnp.float32)
    params = init_params(k_par, IN_DIM, HIDDEN, OUT_DIM)

    out = predictor_forward(inputs, params)
    out = jax.block_until_ready(out)

    ref = predictor_reference(inputs, params)
    assert out.shape == (SEQ, BATCH, OUT_DIM), out.shape
    assert jnp.allclose(out, ref, atol=1e-4, rtol=1e-4), (
        float(jnp.max(jnp.abs(out - ref))))

    print("KERNEL_OK")
</pallas_src>

<mosaic_0001>
module attributes {stable_mosaic.version = 11 : i64} {
  func.func @_lstm_block_kernel(%arg0: i32, %arg1: memref<64x16xf32, #tpu.memory_space<vmem>>, %arg2: memref<16x512xf32, #tpu.memory_space<vmem>>, %arg3: memref<128x512xf32, #tpu.memory_space<vmem>>, %arg4: memref<1x512xf32, #tpu.memory_space<vmem>>, %arg5: memref<128x8xf32, #tpu.memory_space<vmem>>, %arg6: memref<1x8xf32, #tpu.memory_space<vmem>>, %arg7: memref<64x8xf32, #tpu.memory_space<vmem>>, %arg8: memref<8x128xf32, #tpu.memory_space<vmem>>, %arg9: memref<8x128xf32, #tpu.memory_space<vmem>>, %arg10: memref<64x512xf32, #tpu.memory_space<vmem>>, %arg11: memref<64x128xf32, #tpu.memory_space<vmem>>) attributes {dimension_semantics = [#tpu.dimension_semantics<arbitrary>], iteration_bounds = array<i64: 1>, scalar_prefetch = 0 : i64, scratch_operands = 4 : i64, tpu.core_type = #tpu.core_type<tc>, window_params = [{transform_indices = @transform_0, window_bounds = array<i64: 64, 16>}, {pipeline_mode = #tpu.pipeline_mode<synchronous>, transform_indices = @transform_1, window_bounds = array<i64: 16, 512>}, {pipeline_mode = #tpu.pipeline_mode<synchronous>, transform_indices = @transform_2, window_bounds = array<i64: 128, 512>}, {pipeline_mode = #tpu.pipeline_mode<synchronous>, transform_indices = @transform_3, window_bounds = array<i64: 1, 512>}, {pipeline_mode = #tpu.pipeline_mode<synchronous>, transform_indices = @transform_4, window_bounds = array<i64: 128, 8>}, {pipeline_mode = #tpu.pipeline_mode<synchronous>, transform_indices = @transform_5, window_bounds = array<i64: 1, 8>}, {transform_indices = @transform_6, window_bounds = array<i64: 64, 8>}]} {
    %c0_i32 = arith.constant 0 : i32
    %0 = arith.cmpi eq, %arg0, %c0_i32 : i32
    %1 = arith.extui %0 : i1 to i32
    %c0_i32_0 = arith.constant 0 : i32
    %2 = arith.cmpi ne, %1, %c0_i32_0 : i32
    scf.if %2 {
      %cst_98 = arith.constant 0.000000e+00 : f32
      %293 = vector.broadcast %cst_98 : f32 to vector<8x128xf32>
      %c0_99 = arith.constant 0 : index
      %c0_100 = arith.constant 0 : index
      %294 = vector.load %arg8[%c0_99, %c0_100] : memref<8x128xf32, #tpu.memory_space<vmem>>, vector<8x128xf32>
      tpu.vector_store %arg8[%c0_99, %c0_100], %293 {strides = array<i32>} : memref<8x128xf32, #tpu.memory_space<vmem>>, vector<8x128xf32>,
      %cst_101 = arith.constant 0.000000e+00 : f32
      %295 = vector.broadcast %cst_101 : f32 to vector<8x128xf32>
      %c0_102 = arith.constant 0 : index
      %c0_103 = arith.constant 0 : index
      %296 = vector.load %arg9[%c0_102, %c0_103] : memref<8x128xf32, #tpu.memory_space<vmem>>, vector<8x128xf32>
      tpu.vector_store %arg9[%c0_102, %c0_103], %295 {strides = array<i32>} : memref<8x128xf32, #tpu.memory_space<vmem>>, vector<8x128xf32>,
    } else {
    }
    %c0 = arith.constant 0 : index
    %c0_1 = arith.constant 0 : index
    %3 = vector.load %arg1[%c0, %c0_1] : memref<64x16xf32, #tpu.memory_space<vmem>>, vector<64x16xf32>
    %c0_2 = arith.constant 0 : index
    %c0_3 = arith.constant 0 : index
    %4 = vector.load %arg2[%c0_2, %c0_3] : memref<16x512xf32, #tpu.memory_space<vmem>>, vector<16x512xf32>
    %cst = arith.constant dense<0.000000e+00> : vector<64x512xf32>
    %5 = tpu.matmul %3, %4, %cst {dimension_numbers = #tpu.dot_dimension_numbers<[1], [0], [0], [1], [0, 0, 1, 1], [], []>} : vector<64x16xf32>, vector<16x512xf32>, vector<64x512xf32> -> vector<64x512xf32>
    %c0_4 = arith.constant 0 : index
    %c0_5 = arith.constant 0 : index
    %6 = vector.load %arg4[%c0_4, %c0_5] : memref<1x512xf32, #tpu.memory_space<vmem>>, vector<1x512xf32>
    %7 = vector.broadcast %6 : vector<1x512xf32> to vector<64x512xf32>
    %8 = arith.addf %5, %7 : vector<64x512xf32>
    %c0_6 = arith.constant 0 : index
    %c0_7 = arith.constant 0 : index
    %9 = vector.load %arg10[%c0_6, %c0_7] : memref<64x512xf32, #tpu.memory_space<vmem>>, vector<64x512xf32>
    tpu.vector_store %arg10[%c0_6, %c0_7], %8 {strides = array<i32>} : memref<64x512xf32, #tpu.memory_space<vmem>>, vector<64x512xf32>,
    %c0_8 = arith.constant 0 : index
    %c0_9 = arith.constant 0 : index
    %10 = vector.load %arg8[%c0_8, %c0_9] : memref<8x128xf32, #tpu.memory_space<vmem>>, vector<8x128xf32>
    %c0_10 = arith.constant 0 : index
    %c0_11 = arith.constant 0 : index
    %11 = vector.load %arg9[%c0_10, %c0_11] : memref<8x128xf32, #tpu.memory_space<vmem>>, vector<8x128xf32>
    %c0_i32_12 = arith.constant 0 : i32
    %c8_i32 = arith.constant 8 : i32
    %12 = arith.muli %c0_i32_12, %c8_i32 : i32
    %13 = tpu.assume_multiple %12, 8 : i32
    %14 = arith.index_cast %13 : i32 to index
    %c0_13 = arith.constant 0 : index
    %15 = vector.load %arg10[%14, %c0_13] : memref<64x512xf32, #tpu.memory_space<vmem>>, vector<8x512xf32>
    %c0_14 = arith.constant 0 : index
    %c0_15 = arith.constant 0 : index
    %16 = vector.load %arg3[%c0_14, %c0_15] : memref<128x512xf32, #tpu.memory_space<vmem>>, vector<128x512xf32>
    %cst_16 = arith.constant dense<0.000000e+00> : vector<8x512xf32>
    %17 = tpu.matmul %10, %16, %cst_16 {dimension_numbers = #tpu.dot_dimension_numbers<[1], [0], [0], [1], [0, 0, 1, 1], [], []>} : vector<8x128xf32>, vector<128x512xf32>, vector<8x512xf32> -> vector<8x512xf32>
    %18 = arith.addf %15, %17 : vector<8x512xf32>
    %19 = vector.extract_strided_slice %18 {offsets = [0, 0], sizes = [8, 128], strides = [1, 1]} : vector<8x512xf32> to vector<8x128xf32>
    %20 = arith.negf %19 : vector<8x128xf32>
    %21 = math.exp %20 : vector<8x128xf32>
    %cst_17 = arith.constant 1.000000e+00 : f32
    %22 = vector.broadcast %cst_17 : f32 to vector<8x128xf32>
    %23 = arith.addf %22, %21 : vector<8x128xf32>
    %24 = arith.divf %22, %23 : vector<8x128xf32>
    %25 = vector.extract_strided_slice %18 {offsets = [0, 128], sizes = [8, 128], strides = [1, 1]} : vector<8x512xf32> to vector<8x128xf32>
    %26 = arith.negf %25 : vector<8x128xf32>
    %27 = math.exp %26 : vector<8x128xf32>
    %cst_18 = arith.constant 1.000000e+00 : f32
    %28 = vector.broadcast %cst_18 : f32 to vector<8x128xf32>
    %29 = arith.addf %28, %27 : vector<8x128xf32>
    %30 = arith.divf %28, %29 : vector<8x128xf32>
    %31 = vector.extract_strided_slice %18 {offsets = [0, 256], sizes = [8, 128], strides = [1, 1]} : vector<8x512xf32> to vector<8x128xf32>
    %32 = math.tanh %31 : vector<8x128xf32>
    %33 = vector.extract_strided_slice %18 {offsets = [0, 384], sizes = [8, 128], strides = [1, 1]} : vector<8x512xf32> to vector<8x128xf32>
    %34 = arith.negf %33 : vector<8x128xf32>
    %35 = math.exp %34 : vector<8x128xf32>
    %cst_19 = arith.constant 1.000000e+00 : f32
    %36 = vector.broadcast %cst_19 : f32 to vector<8x128xf32>
    %37 = arith.addf %36, %35 : vector<8x128xf32>
    %38 = arith.divf %36, %37 : vector<8x128xf32>
    %39 = arith.mulf %30, %11 : vector<8x128xf32>
    %40 = arith.mulf %24, %32 : vector<8x128xf32>
    %41 = arith.addf %39, %40 : vector<8x128xf32>
    %42 = math.tanh %41 : vector<8x128xf32>
    %43 = arith.mulf %38, %42 : vector<8x128xf32>
    %44 = arith.index_cast %13 : i32 to index
    %c0_20 = arith.constant 0 : index
    %45 = vector.load %arg11[%44, %c0_20] : memref<64x128xf32, #tpu.memory_space<vmem>>, vector<8x128xf32>
    tpu.vector_store %arg11[%44, %c0_20], %43 {strides = array<i32>} : memref<64x128xf32, #tpu.memory_space<vmem>>, vector<8x128xf32>,
    %c1_i32 = arith.constant 1 : i32
    %c8_i32_21 = arith.constant 8 : i32
    %46 = arith.muli %c1_i32, %c8_i32_21 : i32
    %47 = tpu.assume_multiple %46, 8 : i32
    %48 = arith.index_cast %47 : i32 to index
    %c0_22 = arith.constant 0 : index
    %49 = vector.load %arg10[%48, %c0_22] : memref<64x512xf32, #tpu.memory_space<vmem>>, vector<8x512xf32>
    %c0_23 = arith.constant 0 : index
    %c0_24 = arith.constant 0 : index
    %50 = vector.load %arg3[%c0_23, %c0_24] : memref<128x512xf32, #tpu.memory_space<vmem>>, vector<128x512xf32>
    %cst_25 = arith.constant dense<0.000000e+00> : vector<8x512xf32>
    %51 = tpu.matmul %43, %50, %cst_25 {dimension_numbers = #tpu.dot_dimension_numbers<[1], [0], [0], [1], [0, 0, 1, 1], [], []>} : vector<8x128xf32>, vector<128x512xf32>, vector<8x512xf32> -> vector<8x512xf32>
    %52 = arith.addf %49, %51 : vector<8x512xf32>
    %53 = vector.extract_strided_slice %52 {offsets = [0, 0], sizes = [8, 128], strides = [1, 1]} : vector<8x512xf32> to vector<8x128xf32>
    %54 = arith.negf %53 : vector<8x128xf32>
    %55 = math.exp %54 : vector<8x128xf32>
    %cst_26 = arith.constant 1.000000e+00 : f32
    %56 = vector.broadcast %cst_26 : f32 to vector<8x128xf32>
    %57 = arith.addf %56, %55 : vector<8x128xf32>
    %58 = arith.divf %56, %57 : vector<8x128xf32>
    %59 = vector.extract_strided_slice %52 {offsets = [0, 128], sizes = [8, 128], strides = [1, 1]} : vector<8x512xf32> to vector<8x128xf32>
    %60 = arith.negf %59 : vector<8x128xf32>
    %61 = math.exp %60 : vector<8x128xf32>
    %cst_27 = arith.constant 1.000000e+00 : f32
    %62 = vector.broadcast %cst_27 : f32 to vector<8x128xf32>
    %63 = arith.addf %62, %61 : vector<8x128xf32>
    %64 = arith.divf %62, %63 : vector<8x128xf32>
    %65 = vector.extract_strided_slice %52 {offsets = [0, 256], sizes = [8, 128], strides = [1, 1]} : vector<8x512xf32> to vector<8x128xf32>
    %66 = math.tanh %65 : vector<8x128xf32>
    %67 = vector.extract_strided_slice %52 {offsets = [0, 384], sizes = [8, 128], strides = [1, 1]} : vector<8x512xf32> to vector<8x128xf32>
    %68 = arith.negf %67 : vector<8x128xf32>
    %69 = math.exp %68 : vector<8x128xf32>
    %cst_28 = arith.constant 1.000000e+00 : f32
    %70 = vector.broadcast %cst_28 : f32 to vector<8x128xf32>
    %71 = arith.addf %70, %69 : vector<8x128xf32>
    %72 = arith.divf %70, %71 : vector<8x128xf32>
    %73 = arith.mulf %64, %41 : vector<8x128xf32>
    %74 = arith.mulf %58, %66 : vector<8x128xf32>
    %75 = arith.addf %73, %74 : vector<8x128xf32>
    %76 = math.tanh %75 : vector<8x128xf32>
    %77 = arith.mulf %72, %76 : vector<8x128xf32>
    %78 = arith.index_cast %47 : i32 to index
    %c0_29 = arith.constant 0 : index
    %79 = vector.load %arg11[%78, %c0_29] : memref<64x128xf32, #tpu.memory_space<vmem>>, vector<8x128xf32>
    tpu.vector_store %arg11[%78, %c0_29], %77 {strides = array<i32>} : memref<64x128xf32, #tpu.memory_space<vmem>>, vector<8x128xf32>,
    %c2_i32 = arith.constant 2 : i32
    %c8_i32_30 = arith.constant 8 : i32
    %80 = arith.muli %c2_i32, %c8_i32_30 : i32
    %81 = tpu.assume_multiple %80, 8 : i32
    %82 = arith.index_cast %81 : i32 to index
    %c0_31 = arith.constant 0 : index
    %83 = vector.load %arg10[%82, %c0_31] : memref<64x512xf32, #tpu.memory_space<vmem>>, vector<8x512xf32>
    %c0_32 = arith.constant 0 : index
    %c0_33 = arith.constant 0 : index
    %84 = vector.load %arg3[%c0_32, %c0_33] : memref<128x512xf32, #tpu.memory_space<vmem>>, vector<128x512xf32>
    %cst_34 = arith.constant dense<0.000000e+00> : vector<8x512xf32>
    %85 = tpu.matmul %77, %84, %cst_34 {dimension_numbers = #tpu.dot_dimension_numbers<[1], [0], [0], [1], [0, 0, 1, 1], [], []>} : vector<8x128xf32>, vector<128x512xf32>, vector<8x512xf32> -> vector<8x512xf32>
    %86 = arith.addf %83, %85 : vector<8x512xf32>
    %87 = vector.extract_strided_slice %86 {offsets = [0, 0], sizes = [8, 128], strides = [1, 1]} : vector<8x512xf32> to vector<8x128xf32>
    %88 = arith.negf %87 : vector<8x128xf32>
    %89 = math.exp %88 : vector<8x128xf32>
    %cst_35 = arith.constant 1.000000e+00 : f32
    %90 = vector.broadcast %cst_35 : f32 to vector<8x128xf32>
    %91 = arith.addf %90, %89 : vector<8x128xf32>
    %92 = arith.divf %90, %91 : vector<8x128xf32>
    %93 = vector.extract_strided_slice %86 {offsets = [0, 128], sizes = [8, 128], strides = [1, 1]} : vector<8x512xf32> to vector<8x128xf32>
    %94 = arith.negf %93 : vector<8x128xf32>
    %95 = math.exp %94 : vector<8x128xf32>
    %cst_36 = arith.constant 1.000000e+00 : f32
    %96 = vector.broadcast %cst_36 : f32 to vector<8x128xf32>
    %97 = arith.addf %96, %95 : vector<8x128xf32>
    %98 = arith.divf %96, %97 : vector<8x128xf32>
    %99 = vector.extract_strided_slice %86 {offsets = [0, 256], sizes = [8, 128], strides = [1, 1]} : vector<8x512xf32> to vector<8x128xf32>
    %100 = math.tanh %99 : vector<8x128xf32>
    %101 = vector.extract_strided_slice %86 {offsets = [0, 384], sizes = [8, 128], strides = [1, 1]} : vector<8x512xf32> to vector<8x128xf32>
    %102 = arith.negf %101 : vector<8x128xf32>
    %103 = math.exp %102 : vector<8x128xf32>
    %cst_37 = arith.constant 1.000000e+00 : f32
    %104 = vector.broadcast %cst_37 : f32 to vector<8x128xf32>
    %105 = arith.addf %104, %103 : vector<8x128xf32>
    %106 = arith.divf %104, %105 : vector<8x128xf32>
    %107 = arith.mulf %98, %75 : vector<8x128xf32>
    %108 = arith.mulf %92, %100 : vector<8x128xf32>
    %109 = arith.addf %107, %108 : vector<8x128xf32>
    %110 = math.tanh %109 : vector<8x128xf32>
    %111 = arith.mulf %106, %110 : vector<8x128xf32>
    %112 = arith.index_cast %81 : i32 to index
    %c0_38 = arith.constant 0 : index
    %113 = vector.load %arg11[%112, %c0_38] : memref<64x128xf32, #tpu.memory_space<vmem>>, vector<8x128xf32>
    tpu.vector_store %arg11[%112, %c0_38], %111 {strides = array<i32>} : memref<64x128xf32, #tpu.memory_space<vmem>>, vector<8x128xf32>,
    %c3_i32 = arith.constant 3 : i32
    %c8_i32_39 = arith.constant 8 : i32
    %114 = arith.muli %c3_i32, %c8_i32_39 : i32
    %115 = tpu.assume_multiple %114, 8 : i32
    %116 = arith.index_cast %115 : i32 to index
    %c0_40 = arith.constant 0 : index
    %117 = vector.load %arg10[%116, %c0_40] : memref<64x512xf32, #tpu.memory_space<vmem>>, vector<8x512xf32>
    %c0_41 = arith.constant 0 : index
    %c0_42 = arith.constant 0 : index
    %118 = vector.load %arg3[%c0_41, %c0_42] : memref<128x512xf32, #tpu.memory_space<vmem>>, vector<128x512xf32>
    %cst_43 = arith.constant dense<0.000000e+00> : vector<8x512xf32>
    %119 = tpu.matmul %111, %118, %cst_43 {dimension_numbers = #tpu.dot_dimension_numbers<[1], [0], [0], [1], [0, 0, 1, 1], [], []>} : vector<8x128xf32>, vector<128x512xf32>, vector<8x512xf32> -> vector<8x512xf32>
    %120 = arith.addf %117, %119 : vector<8x512xf32>
    %121 = vector.extract_strided_slice %120 {offsets = [0, 0], sizes = [8, 128], strides = [1, 1]} : vector<8x512xf32> to vector<8x128xf32>
    %122 = arith.negf %121 : vector<8x128xf32>
    %123 = math.exp %122 : vector<8x128xf32>
    %cst_44 = arith.constant 1.000000e+00 : f32
    %124 = vector.broadcast %cst_44 : f32 to vector<8x128xf32>
    %125 = arith.addf %124, %123 : vector<8x128xf32>
    %126 = arith.divf %124, %125 : vector<8x128xf32>
    %127 = vector.extract_strided_slice %120 {offsets = [0, 128], sizes = [8, 128], strides = [1, 1]} : vector<8x512xf32> to vector<8x128xf32>
    %128 = arith.negf %127 : vector<8x128xf32>
    %129 = math.exp %128 : vector<8x128xf32>
    %cst_45 = arith.constant 1.000000e+00 : f32
    %130 = vector.broadcast %cst_45 : f32 to vector<8x128xf32>
    %131 = arith.addf %130, %129 : vector<8x128xf32>
    %132 = arith.divf %130, %131 : vector<8x128xf32>
    %133 = vector.extract_strided_slice %120 {offsets = [0, 256], sizes = [8, 128], strides = [1, 1]} : vector<8x512xf32> to vector<8x128xf32>
    %134 = math.tanh %133 : vector<8x128xf32>
    %135 = vector.extract_strided_slice %120 {offsets = [0, 384], sizes = [8, 128], strides = [1, 1]} : vector<8x512xf32> to vector<8x128xf32>
    %136 = arith.negf %135 : vector<8x128xf32>
    %137 = math.exp %136 : vector<8x128xf32>
    %cst_46 = arith.constant 1.000000e+00 : f32
    %138 = vector.broadcast %cst_46 : f32 to vector<8x128xf32>
    %139 = arith.addf %138, %137 : vector<8x128xf32>
    %140 = arith.divf %138, %139 : vector<8x128xf32>
    %141 = arith.mulf %132, %109 : vector<8x128xf32>
    %142 = arith.mulf %126, %134 : vector<8x128xf32>
    %143 = arith.addf %141, %142 : vector<8x128xf32>
    %144 = math.tanh %143 : vector<8x128xf32>
    %145 = arith.mulf %140, %144 : vector<8x128xf32>
    %146 = arith.index_cast %115 : i32 to index
    %c0_47 = arith.constant 0 : index
    %147 = vector.load %arg11[%146, %c0_47] : memref<64x128xf32, #tpu.memory_space<vmem>>, vector<8x128xf32>
    tpu.vector_store %arg11[%146, %c0_47], %145 {strides = array<i32>} : memref<64x128xf32, #tpu.memory_space<vmem>>, vector<8x128xf32>,
    %c4_i32 = arith.constant 4 : i32
    %c8_i32_48 = arith.constant 8 : i32
    %148 = arith.muli %c4_i32, %c8_i32_48 : i32
    %149 = tpu.assume_multiple %148, 8 : i32
    %150 = arith.index_cast %149 : i32 to index
    %c0_49 = arith.constant 0 : index
    %151 = vector.load %arg10[%150, %c0_49] : memref<64x512xf32, #tpu.memory_space<vmem>>, vector<8x512xf32>
    %c0_50 = arith.constant 0 : index
    %c0_51 = arith.constant 0 : index
    %152 = vector.load %arg3[%c0_50, %c0_51] : memref<128x512xf32, #tpu.memory_space<vmem>>, vector<128x512xf32>
    %cst_52 = arith.constant dense<0.000000e+00> : vector<8x512xf32>
    %153 = tpu.matmul %145, %152, %cst_52 {dimension_numbers = #tpu.dot_dimension_numbers<[1], [0], [0], [1], [0, 0, 1, 1], [], []>} : vector<8x128xf32>, vector<128x512xf32>, vector<8x512xf32> -> vector<8x512xf32>
    %154 = arith.addf %151, %153 : vector<8x512xf32>
    %155 = vector.extract_strided_slice %154 {offsets = [0, 0], sizes = [8, 128], strides = [1, 1]} : vector<8x512xf32> to vector<8x128xf32>
    %156 = arith.negf %155 : vector<8x128xf32>
    %157 = math.exp %156 : vector<8x128xf32>
    %cst_53 = arith.constant 1.000000e+00 : f32
    %158 = vector.broadcast %cst_53 : f32 to vector<8x128xf32>
    %159 = arith.addf %158, %157 : vector<8x128xf32>
    %160 = arith.divf %158, %159 : vector<8x128xf32>
    %161 = vector.extract_strided_slice %154 {offsets = [0, 128], sizes = [8, 128], strides = [1, 1]} : vector<8x512xf32> to vector<8x128xf32>
    %162 = arith.negf %161 : vector<8x128xf32>
    %163 = math.exp %162 : vector<8x128xf32>
    %cst_54 = arith.constant 1.000000e+00 : f32
    %164 = vector.broadcast %cst_54 : f32 to vector<8x128xf32>
    %165 = arith.addf %164, %163 : vector<8x128xf32>
    %166 = arith.divf %164, %165 : vector<8x128xf32>
    %167 = vector.extract_strided_slice %154 {offsets = [0, 256], sizes = [8, 128], strides = [1, 1]} : vector<8x512xf32> to vector<8x128xf32>
    %168 = math.tanh %167 : vector<8x128xf32>
    %169 = vector.extract_strided_slice %154 {offsets = [0, 384], sizes = [8, 128], strides = [1, 1]} : vector<8x512xf32> to vector<8x128xf32>
    %170 = arith.negf %169 : vector<8x128xf32>
    %171 = math.exp %170 : vector<8x128xf32>
    %cst_55 = arith.constant 1.000000e+00 : f32
    %172 = vector.broadcast %cst_55 : f32 to vector<8x128xf32>
    %173 = arith.addf %172, %171 : vector<8x128xf32>
    %174 = arith.divf %172, %173 : vector<8x128xf32>
    %175 = arith.mulf %166, %143 : vector<8x128xf32>
    %176 = arith.mulf %160, %168 : vector<8x128xf32>
    %177 = arith.addf %175, %176 : vector<8x128xf32>
    %178 = math.tanh %177 : vector<8x128xf32>
    %179 = arith.mulf %174, %178 : vector<8x128xf32>
    %180 = arith.index_cast %149 : i32 to index
    %c0_56 = arith.constant 0 : index
    %181 = vector.load %arg11[%180, %c0_56] : memref<64x128xf32, #tpu.memory_space<vmem>>, vector<8x128xf32>
    tpu.vector_store %arg11[%180, %c0_56], %179 {strides = array<i32>} : memref<64x128xf32, #tpu.memory_space<vmem>>, vector<8x128xf32>,
    %c5_i32 = arith.constant 5 : i32
    %c8_i32_57 = arith.constant 8 : i32
    %182 = arith.muli %c5_i32, %c8_i32_57 : i32
    %183 = tpu.assume_multiple %182, 8 : i32
    %184 = arith.index_cast %183 : i32 to index
    %c0_58 = arith.constant 0 : index
    %185 = vector.load %arg10[%184, %c0_58] : memref<64x512xf32, #tpu.memory_space<vmem>>, vector<8x512xf32>
    %c0_59 = arith.constant 0 : index
    %c0_60 = arith.constant 0 : index
    %186 = vector.load %arg3[%c0_59, %c0_60] : memref<128x512xf32, #tpu.memory_space<vmem>>, vector<128x512xf32>
    %cst_61 = arith.constant dense<0.000000e+00> : vector<8x512xf32>
    %187 = tpu.matmul %179, %186, %cst_61 {dimension_numbers = #tpu.dot_dimension_numbers<[1], [0], [0], [1], [0, 0, 1, 1], [], []>} : vector<8x128xf32>, vector<128x512xf32>, vector<8x512xf32> -> vector<8x512xf32>
    %188 = arith.addf %185, %187 : vector<8x512xf32>
    %189 = vector.extract_strided_slice %188 {offsets = [0, 0], sizes = [8, 128], strides = [1, 1]} : vector<8x512xf32> to vector<8x128xf32>
    %190 = arith.negf %189 : vector<8x128xf32>
    %191 = math.exp %190 : vector<8x128xf32>
    %cst_62 = arith.constant 1.000000e+00 : f32
    %192 = vector.broadcast %cst_62 : f32 to vector<8x128xf32>
    %193 = arith.addf %192, %191 : vector<8x128xf32>
    %194 = arith.divf %192, %193 : vector<8x128xf32>
    %195 = vector.extract_strided_slice %188 {offsets = [0, 128], sizes = [8, 128], strides = [1, 1]} : vector<8x512xf32> to vector<8x128xf32>
    %196 = arith.negf %195 : vector<8x128xf32>
    %197 = math.exp %196 : vector<8x128xf32>
    %cst_63 = arith.constant 1.000000e+00 : f32
    %198 = vector.broadcast %cst_63 : f32 to vector<8x128xf32>
    %199 = arith.addf %198, %197 : vector<8x128xf32>
    %200 = arith.divf %198, %199 : vector<8x128xf32>
    %201 = vector.extract_strided_slice %188 {offsets = [0, 256], sizes = [8, 128], strides = [1, 1]} : vector<8x512xf32> to vector<8x128xf32>
    %202 = math.tanh %201 : vector<8x128xf32>
    %203 = vector.extract_strided_slice %188 {offsets = [0, 384], sizes = [8, 128], strides = [1, 1]} : vector<8x512xf32> to vector<8x128xf32>
    %204 = arith.negf %203 : vector<8x128xf32>
    %205 = math.exp %204 : vector<8x128xf32>
    %cst_64 = arith.constant 1.000000e+00 : f32
    %206 = vector.broadcast %cst_64 : f32 to vector<8x128xf32>
    %207 = arith.addf %206, %205 : vector<8x128xf32>
    %208 = arith.divf %206, %207 : vector<8x128xf32>
    %209 = arith.mulf %200, %177 : vector<8x128xf32>
    %210 = arith.mulf %194, %202 : vector<8x128xf32>
    %211 = arith.addf %209, %210 : vector<8x128xf32>
    %212 = math.tanh %211 : vector<8x128xf32>
    %213 = arith.mulf %208, %212 : vector<8x128xf32>
    %214 = arith.index_cast %183 : i32 to index
    %c0_65 = arith.constant 0 : index
    %215 = vector.load %arg11[%214, %c0_65] : memref<64x128xf32, #tpu.memory_space<vmem>>, vector<8x128xf32>
    tpu.vector_store %arg11[%214, %c0_65], %213 {strides = array<i32>} : memref<64x128xf32, #tpu.memory_space<vmem>>, vector<8x128xf32>,
    %c6_i32 = arith.constant 6 : i32
    %c8_i32_66 = arith.constant 8 : i32
    %216 = arith.muli %c6_i32, %c8_i32_66 : i32
    %217 = tpu.assume_multiple %216, 8 : i32
    %218 = arith.index_cast %217 : i32 to index
    %c0_67 = arith.constant 0 : index
    %219 = vector.load %arg10[%218, %c0_67] : memref<64x512xf32, #tpu.memory_space<vmem>>, vector<8x512xf32>
    %c0_68 = arith.constant 0 : index
    %c0_69 = arith.constant 0 : index
    %220 = vector.load %arg3[%c0_68, %c0_69] : memref<128x512xf32, #tpu.memory_space<vmem>>, vector<128x512xf32>
    %cst_70 = arith.constant dense<0.000000e+00> : vector<8x512xf32>
    %221 = tpu.matmul %213, %220, %cst_70 {dimension_numbers = #tpu.dot_dimension_numbers<[1], [0], [0], [1], [0, 0, 1, 1], [], []>} : vector<8x128xf32>, vector<128x512xf32>, vector<8x512xf32> -> vector<8x512xf32>
    %222 = arith.addf %219, %221 : vector<8x512xf32>
    %223 = vector.extract_strided_slice %222 {offsets = [0, 0], sizes = [8, 128], strides = [1, 1]} : vector<8x512xf32> to vector<8x128xf32>
    %224 = arith.negf %223 : vector<8x128xf32>
    %225 = math.exp %224 : vector<8x128xf32>
    %cst_71 = arith.constant 1.000000e+00 : f32
    %226 = vector.broadcast %cst_71 : f32 to vector<8x128xf32>
    %227 = arith.addf %226, %225 : vector<8x128xf32>
    %228 = arith.divf %226, %227 : vector<8x128xf32>
    %229 = vector.extract_strided_slice %222 {offsets = [0, 128], sizes = [8, 128], strides = [1, 1]} : vector<8x512xf32> to vector<8x128xf32>
    %230 = arith.negf %229 : vector<8x128xf32>
    %231 = math.exp %230 : vector<8x128xf32>
    %cst_72 = arith.constant 1.000000e+00 : f32
    %232 = vector.broadcast %cst_72 : f32 to vector<8x128xf32>
    %233 = arith.addf %232, %231 : vector<8x128xf32>
    %234 = arith.divf %232, %233 : vector<8x128xf32>
    %235 = vector.extract_strided_slice %222 {offsets = [0, 256], sizes = [8, 128], strides = [1, 1]} : vector<8x512xf32> to vector<8x128xf32>
    %236 = math.tanh %235 : vector<8x128xf32>
    %237 = vector.extract_strided_slice %222 {offsets = [0, 384], sizes = [8, 128], strides = [1, 1]} : vector<8x512xf32> to vector<8x128xf32>
    %238 = arith.negf %237 : vector<8x128xf32>
    %239 = math.exp %238 : vector<8x128xf32>
    %cst_73 = arith.constant 1.000000e+00 : f32
    %240 = vector.broadcast %cst_73 : f32 to vector<8x128xf32>
    %241 = arith.addf %240, %239 : vector<8x128xf32>
    %242 = arith.divf %240, %241 : vector<8x128xf32>
    %243 = arith.mulf %234, %211 : vector<8x128xf32>
    %244 = arith.mulf %228, %236 : vector<8x128xf32>
    %245 = arith.addf %243, %244 : vector<8x128xf32>
    %246 = math.tanh %245 : vector<8x128xf32>
    %247 = arith.mulf %242, %246 : vector<8x128xf32>
    %248 = arith.index_cast %217 : i32 to index
    %c0_74 = arith.constant 0 : index
    %249 = vector.load %arg11[%248, %c0_74] : memref<64x128xf32, #tpu.memory_space<vmem>>, vector<8x128xf32>
    tpu.vector_store %arg11[%248, %c0_74], %247 {strides = array<i32>} : memref<64x128xf32, #tpu.memory_space<vmem>>, vector<8x128xf32>,
    %c7_i32 = arith.constant 7 : i32
    %c8_i32_75 = arith.constant 8 : i32
    %250 = arith.muli %c7_i32, %c8_i32_75 : i32
    %251 = tpu.assume_multiple %250, 8 : i32
    %252 = arith.index_cast %251 : i32 to index
    %c0_76 = arith.constant 0 : index
    %253 = vector.load %arg10[%252, %c0_76] : memref<64x512xf32, #tpu.memory_space<vmem>>, vector<8x512xf32>
    %c0_77 = arith.constant 0 : index
    %c0_78 = arith.constant 0 : index
    %254 = vector.load %arg3[%c0_77, %c0_78] : memref<128x512xf32, #tpu.memory_space<vmem>>, vector<128x512xf32>
    %cst_79 = arith.constant dense<0.000000e+00> : vector<8x512xf32>
    %255 = tpu.matmul %247, %254, %cst_79 {dimension_numbers = #tpu.dot_dimension_numbers<[1], [0], [0], [1], [0, 0, 1, 1], [], []>} : vector<8x128xf32>, vector<128x512xf32>, vector<8x512xf32> -> vector<8x512xf32>
    %256 = arith.addf %253, %255 : vector<8x512xf32>
    %257 = vector.extract_strided_slice %256 {offsets = [0, 0], sizes = [8, 128], strides = [1, 1]} : vector<8x512xf32> to vector<8x128xf32>
    %258 = arith.negf %257 : vector<8x128xf32>
    %259 = math.exp %258 : vector<8x128xf32>
    %cst_80 = arith.constant 1.000000e+00 : f32
    %260 = vector.broadcast %cst_80 : f32 to vector<8x128xf32>
    %261 = arith.addf %260, %259 : vector<8x128xf32>
    %262 = arith.divf %260, %261 : vector<8x128xf32>
    %263 = vector.extract_strided_slice %256 {offsets = [0, 128], sizes = [8, 128], strides = [1, 1]} : vector<8x512xf32> to vector<8x128xf32>
    %264 = arith.negf %263 : vector<8x128xf32>
    %265 = math.exp %264 : vector<8x128xf32>
    %cst_81 = arith.constant 1.000000e+00 : f32
    %266 = vector.broadcast %cst_81 : f32 to vector<8x128xf32>
    %267 = arith.addf %266, %265 : vector<8x128xf32>
    %268 = arith.divf %266, %267 : vector<8x128xf32>
    %269 = vector.extract_strided_slice %256 {offsets = [0, 256], sizes = [8, 128], strides = [1, 1]} : vector<8x512xf32> to vector<8x128xf32>
    %270 = math.tanh %269 : vector<8x128xf32>
    %271 = vector.extract_strided_slice %256 {offsets = [0, 384], sizes = [8, 128], strides = [1, 1]} : vector<8x512xf32> to vector<8x128xf32>
    %272 = arith.negf %271 : vector<8x128xf32>
    %273 = math.exp %272 : vector<8x128xf32>
    %cst_82 = arith.constant 1.000000e+00 : f32
    %274 = vector.broadcast %cst_82 : f32 to vector<8x128xf32>
    %275 = arith.addf %274, %273 : vector<8x128xf32>
    %276 = arith.divf %274, %275 : vector<8x128xf32>
    %277 = arith.mulf %268, %245 : vector<8x128xf32>
    %278 = arith.mulf %262, %270 : vector<8x128xf32>
    %279 = arith.addf %277, %278 : vector<8x128xf32>
    %280 = math.tanh %279 : vector<8x128xf32>
    %281 = arith.mulf %276, %280 : vector<8x128xf32>
    %282 = arith.index_cast %251 : i32 to index
    %c0_83 = arith.constant 0 : index
    %283 = vector.load %arg11[%282, %c0_83] : memref<64x128xf32, #tpu.memory_space<vmem>>, vector<8x128xf32>
    tpu.vector_store %arg11[%282, %c0_83], %281 {strides = array<i32>} : memref<64x128xf32, #tpu.memory_space<vmem>>, vector<8x128xf32>,
    %c8_i32_84 = arith.constant 8 : i32
    %c0_85 = arith.constant 0 : index
    %c0_86 = arith.constant 0 : index
    %284 = vector.load %arg8[%c0_85, %c0_86] : memref<8x128xf32, #tpu.memory_space<vmem>>, vector<8x128xf32>
    tpu.vector_store %arg8[%c0_85, %c0_86], %281 {strides = array<i32>} : memref<8x128xf32, #tpu.memory_space<vmem>>, vector<8x128xf32>,
    %c0_87 = arith.constant 0 : index
    %c0_88 = arith.constant 0 : index
    %285 = vector.load %arg9[%c0_87, %c0_88] : memref<8x128xf32, #tpu.memory_space<vmem>>, vector<8x128xf32>
    tpu.vector_store %arg9[%c0_87, %c0_88], %279 {strides = array<i32>} : memref<8x128xf32, #tpu.memory_space<vmem>>, vector<8x128xf32>,
    %c0_89 = arith.constant 0 : index
    %c0_90 = arith.constant 0 : index
    %286 = vector.load %arg11[%c0_89, %c0_90] : memref<64x128xf32, #tpu.memory_space<vmem>>, vector<64x128xf32>
    %c0_91 = arith.constant 0 : index
    %c0_92 = arith.constant 0 : index
    %287 = vector.load %arg5[%c0_91, %c0_92] : memref<128x8xf32, #tpu.memory_space<vmem>>, vector<128x8xf32>
    %cst_93 = arith.constant dense<0.000000e+00> : vector<64x8xf32>
    %288 = tpu.matmul %286, %287, %cst_93 {dimension_numbers = #tpu.dot_dimension_numbers<[1], [0], [0], [1], [0, 0, 1, 1], [], []>} : vector<64x128xf32>, vector<128x8xf32>, vector<64x8xf32> -> vector<64x8xf32>
    %c0_94 = arith.constant 0 : index
    %c0_95 = arith.constant 0 : index
    %289 = vector.load %arg6[%c0_94, %c0_95] : memref<1x8xf32, #tpu.memory_space<vmem>>, vector<1x8xf32>
    %290 = vector.broadcast %289 : vector<1x8xf32> to vector<64x8xf32>
    %291 = arith.addf %288, %290 : vector<64x8xf32>
    %c0_96 = arith.constant 0 : index
    %c0_97 = arith.constant 0 : index
    %292 = vector.load %arg7[%c0_96, %c0_97] : memref<64x8xf32, #tpu.memory_space<vmem>>, vector<64x8xf32>
    tpu.vector_store %arg7[%c0_96, %c0_97], %291 {strides = array<i32>} : memref<64x8xf32, #tpu.memory_space<vmem>>, vector<64x8xf32>,
    return
  }
  func.func @transform_0(%arg0: i32) -> (i32, i32) {
    %c0_i32 = arith.constant 0 : i32
    %c0_i32_0 = arith.constant 0 : i32
    return %arg0, %c0_i32 : i32, i32
  }
  func.func @transform_1(%arg0: i32) -> (i32, i32) {
    %c0_i32 = arith.constant 0 : i32
    %c0_i32_0 = arith.constant 0 : i32
    %c0_i32_1 = arith.constant 0 : i32
    return %c0_i32, %c0_i32_0 : i32, i32
  }
  func.func @transform_2(%arg0: i32) -> (i32, i32) {
    %c0_i32 = arith.constant 0 : i32
    %c0_i32_0 = arith.constant 0 : i32
    %c0_i32_1 = arith.constant 0 : i32
    return %c0_i32, %c0_i32_0 : i32, i32
  }
  func.func @transform_3(%arg0: i32) -> (i32, i32) {
    %c0_i32 = arith.constant 0 : i32
    %c0_i32_0 = arith.constant 0 : i32
    %c0_i32_1 = arith.constant 0 : i32
    return %c0_i32, %c0_i32_0 : i32, i32
  }
  func.func @transform_4(%arg0: i32) -> (i32, i32) {
    %c0_i32 = arith.constant 0 : i32
    %c0_i32_0 = arith.constant 0 : i32
    %c0_i32_1 = arith.constant 0 : i32
    return %c0_i32, %c0_i32_0 : i32, i32
  }
  func.func @transform_5(%arg0: i32) -> (i32, i32) {
    %c0_i32 = arith.constant 0 : i32
    %c0_i32_0 = arith.constant 0 : i32
    %c0_i32_1 = arith.constant 0 : i32
    return %c0_i32, %c0_i32_0 : i32, i32
  }
  func.func @transform_6(%arg0: i32) -> (i32, i32) {
    %c0_i32 = arith.constant 0 : i32
    %c0_i32_0 = arith.constant 0 : i32
    return %arg0, %c0_i32 : i32, i32
  }
}

</mosaic_0001>

<bundles_post_ra>
// kernel: tpu_custom_call.1
= control target key start
LH: loop header
LB: loop body
LE: loop exit
PB: predicated region body
PF: predicated region fallthrough
CT: control target
= control target key end

     0   :  { %11 = vsyncpa [#allocation7], 0  ;;  %s2364_s24 = smov [#allocation6]   ;;  %s2365_s26 = smov 512   ;;  %s3758_s0 = inlined_call_operand.vmem [shape: f32[64,16], index: 0, kind: input, shape index: {}]   ;;  %s3759_s1 = inlined_call_operand.vmem [shape: f32[16,512], index: 1, kind: input, shape index: {}]   ;;  %s3760_s2 = inlined_call_operand.hbm [shape: f32[128,512], index: 2, kind: input, shape index: {}]   ;;  %s3761_s3 = inlined_call_operand.vmem [shape: f32[1,512], index: 3, kind: input, shape index: {}]   ;;  %s3762_s4 = inlined_call_operand.vmem [shape: f32[128,8], index: 4, kind: input, shape index: {}]   ;;  %s3763_s5 = inlined_call_operand.vmem [shape: f32[1,8], index: 5, kind: input, shape index: {}]   ;;  %s3764_s6 = inlined_call_operand.vmem [shape: f32[64,8], index: 6, kind: output, shape index: {}]  }
   0x1   :  { %s20_s23 = sshll.u32 %s3760_s2, 4  ;;  %s22_s25 = sshll.u32 %s2364_s24, 4  ;;  %s21_s23 = int_to_ptr.hbm [resolvable:$true] %s20_s23  ;;  %s23_s25 = int_to_ptr.vmem [resolvable:$true] %s22_s25 }
   0x2   :  { %s2366_s27 = smov 32  }
   0x3   :  { %28 = dma.hbm_to_vmem [thread:$0]  %s21_s23, 8192, %s23_s25, [#allocation7], %s2365_s26, %s2365_s26, %s2366_s27  }
   0x4   :  { %2362 = dma.done.wait [#allocation7], 8192  }
   0x5   :  { %2363 = vsyncadd [#allocation7], 4294959104  ;;  %v57_v0 = vld [vmem:[%s3759_s1 + $0x20] sm:$0xff]  ;;  %v59_v1 = vld [vmem:[%s3759_s1 + $0x30] sm:$0xff]  ;;  %vm71_vm0 = vcmask 130048  }
   0x6   :  { %v53_v2 = vld [vmem:[%s3759_s1] sm:$0xff]  ;;  %2201 = vmatpush.msra.mxu1 %v57_v0  ;;  %2202 = vmatpush.msra.mxu3 %v57_v0  ;;  %v55_v3 = vld [vmem:[%s3759_s1 + $0x10] sm:$0xff]  ;;  %v2426_v5 = vld [vmem:[%s3758_s0 + $0x28] sm:$0xff] }
   0x7   :  { %v2421_v4 = vld [vmem:[%s3758_s0 + $0x20] sm:$0xff]  ;;  %192 = vmatpush.msra.mxu2 %v59_v1  ;;  %110 = vmatpush.msra.mxu0 %v57_v0  ;;  %v60_v7 = vld [vmem:[%s3759_s1 + $0x38] sm:$0xff]  ;;  %v58_v8 = vld [vmem:[%s3759_s1 + $0x28] sm:$0xff] }
   0x8   :  { %v2431_v6 = vld [vmem:[%s3758_s0] sm:$0xff]  ;;  %2203 = vmatpush.msra.mxu1 %v53_v2  ;;  %2204 = vmatpush.msra.mxu3 %v53_v2  ;;  %v54_v10 = vld [vmem:[%s3759_s1 + $0x8] sm:$0xff]  ;;  %v56_v11 = vld [vmem:[%s3759_s1 + $0x18] sm:$0xff] }
   0x9   :  { %193 = vmatpush.msra.mxu2 %v55_v3  ;;  %2149 = vmatmul.msk.f32.vlgmr.msra.gmra.mxu1 %vm71_vm0, %v2421_v4  ;;  %v2441_v9 = vld [vmem:[#allocation6 + $0x1e0] sm:$0xff]  ;;  %v2455_v13 = vld [vmem:[#allocation6 + $0x1e8] sm:$0xff]  ;;  %v2462_v16 = vld [vmem:[#allocation6 + $0x1f8] sm:$0xff] }
   0xa   :  { %2150 = vmatmul.msk.f32.vlgmr.msra.gmra.mxu3 %vm71_vm0, %v2426_v5  ;;  %2161 = vmatmul.msk.f32.vlgmr.msra.gmra.mxu2 %vm71_vm0, %v2431_v6  ;;  %v2453_v12 = vld [vmem:[#allocation6 + $0x1c0] sm:$0xff]  ;;  %v2460_v15 = vld [vmem:[#allocation6 + $0x1c8] sm:$0xff]  ;;  %v2469_v17 = vld [vmem:[%s3758_s0 + $0x30] sm:$0xff] }
   0xb   :  { %233 = vmatpush.msrb.mxu3 %v60_v7  ;;  %151 = vmatpush.msrb.mxu1 %v58_v8  ;;  %v2458_v14 = vld [vmem:[#allocation6 + $0x1a0] sm:$0xff]  ;;  %v2474_v18 = vld [vmem:[%s3758_s0 + $0x8] sm:$0xff]  ;;  %v2477_v19 = vld [vmem:[#allocation6 + $0x1d8] sm:$0xff] }
   0xc   :  { %365 = vmatpush.msrb.mxu2 %v2441_v9  ;;  %111 = vmatpush.msra.mxu0 %v53_v2  ;;  %v2482_v20 = vld [vmem:[#allocation6 + $0x180] sm:$0xff]  ;;  %v2485_v21 = vld [vmem:[#allocation6 + $0x1a8] sm:$0xff]  ;;  %v2490_v22 = vld [vmem:[#allocation6 + $0x1b8] sm:$0xff] }
   0xd   :  { %152 = vmatpush.msrb.mxu1 %v54_v10  ;;  %234 = vmatpush.msrb.mxu3 %v56_v11  ;;  %v2496_v23 = vld [vmem:[#allocation6 + $0x160] sm:$0xff]  ;;  %v2498_v24 = vld [vmem:[#allocation6 + $0x188] sm:$0xff]  ;;  %v2502_v25 = vld [vmem:[#allocation6 + $0x198] sm:$0xff] }
   0xe   :  { %366 = vmatpush.msrb.mxu2 %v2453_v12  ;;  %2145 = vmatmul.msk.f32.vlgmr.msra.gmra.mxu0 %vm71_vm0, %v2431_v6  ;;  %v2504_v26 = vld [vmem:[#allocation6 + $0x140] sm:$0xff]  ;;  %v2507_v27 = vld [vmem:[#allocation6 + $0x168] sm:$0xff]  ;;  %v2512_v28 = vld [vmem:[#allocation6 + $0x178] sm:$0xff] }
   0xf   :  { %385 = vmatpush.msra.mxu1 %v2455_v13  ;;  %425 = vmatpush.msra.mxu3 %v2462_v16  ;;  %v337_v29 = vld [vmem:[#allocation6 + $0x120] sm:$0xff]  ;;  %v2519_v30 = vld [vmem:[%s3758_s0 + $0x38] sm:$0xff]  ;;  %v2524_v31 = vld [vmem:[%s3758_s0 + $0x10] sm:$0xff] }
  0x10   :  { %367 = vmatpush.msrb.mxu2 %v2458_v14  ;;  %584 = vmatpush.msrb.mxu0 %v2441_v9  ;;  %v333_v32 = vld [vmem:[#allocation6 + $0x100] sm:$0xff]  ;;  %v2528_v33 = vld [vmem:[#allocation6 + $0x148] sm:$0xff]  ;;  %v2534_v34 = vld [vmem:[#allocation6 + $0x158] sm:$0xff] }
  0x11   :  { %386 = vmatpush.msra.mxu1 %v2460_v15  ;;  %426 = vmatpush.msra.mxu3 %v2477_v19  ;;  %v2540_v35 = vld [vmem:[#allocation6 + $0xe0] sm:$0xff]  ;;  %v2542_v36 = vld [vmem:[#allocation6 + $0x128] sm:$0xff]  ;;  %v2545_v37 = vld [vmem:[#allocation6 + $0x138] sm:$0xff] }
  0x12   :  { %2153 = vmatmul.msk.f32.vlgmr.msrb.gmra.mxu1 %vm71_vm0, %v2431_v6  ;;  %2151 = vmatmul.msk.f32.gmra.mxu3 %vm71_vm0, %v2469_v17  ;;  %v2547_v38 = vld [vmem:[#allocation6 + $0xc0] sm:$0xff]  ;;  %v2550_v39 = vld [vmem:[#allocation6 + $0x108] sm:$0xff]  ;;  %v2555_v40 = vld [vmem:[#allocation6 + $0x118] sm:$0xff] }
  0x13   :  { %2162 = vmatmul.msk.f32.gmra.mxu2 %vm71_vm0, %v2474_v18  ;;  %387 = vmatpush.msra.mxu1 %v2485_v21  ;;  %v2557_v41 = vld [vmem:[#allocation6 + $0xa0] sm:$0xff]  ;;  %v2565_v42 = vld [vmem:[%s3758_s0 + $0x18] sm:$0xff]  ;;  %v2571_v44 = vld [vmem:[#allocation6 + $0xe8] sm:$0xff] }
  0x14   :  { %368 = vmatpush.msrb.mxu2 %v2482_v20  ;;  %427 = vmatpush.msra.mxu3 %v2490_v22  ;;  %v2569_v43 = vld [vmem:[#allocation6 + $0x80] sm:$0xff]  ;;  %v2584_v46 = vld [vmem:[#allocation6 + $0xc8] sm:$0xff]  ;;  %v2586_v47 = vld [vmem:[#allocation6 + $0xf8] sm:$0xff] }
  0x15   :  { %388 = vmatpush.msra.mxu1 %v2498_v24  ;;  %585 = vmatpush.msrb.mxu0 %v2453_v12  ;;  %v2582_v45 = vld [vmem:[#allocation6 + $0x60] sm:$0xff]  ;;  %v2590_v48 = vld [vmem:[#allocation6 + $0xd8] sm:$0xff]  ;;  %v2595_v50 = vld [vmem:[#allocation6 + $0xa8] sm:$0xff] }
  0x16   :  { %369 = vmatpush.msrb.mxu2 %v2496_v23  ;;  %428 = vmatpush.msra.mxu3 %v2502_v25  ;;  %v2592_v49 = vld [vmem:[#allocation6 + $0x40] sm:$0xff]  ;;  %v2607_v53 = vld [vmem:[#allocation6 + $0x88] sm:$0xff]  ;;  %v2612_v54 = vld [vmem:[#allocation6 + $0x1f0] sm:$0xff] }
  0x17   :  { %389 = vmatpush.msra.mxu1 %v2507_v27  ;;  %586 = vmatpush.msrb.mxu0 %v2458_v14  ;;  %v2600_v51 = vld [vmem:[#allocation6 + $0x20] sm:$0xff]  ;;  %v2618_v55 = vld [vmem:[#allocation6 + $0xb8] sm:$0xff]  ;;  %v2620_v56 = vld [vmem:[#allocation6 + $0x68] sm:$0xff] }
  0x18   :  { %370 = vmatpush.msrb.mxu2 %v2504_v26  ;;  %429 = vmatpush.msra.mxu3 %v2512_v28  ;;  %v2605_v52 = vld [vmem:[#allocation6] sm:$0xff]  ;;  %v2623_v57 = vld [vmem:[#allocation6 + $0x1d0] sm:$0xff]  ;;  %v2626_v58 = vld [vmem:[#allocation6 + $0x98] sm:$0xff] }
  0x19   :  { %390 = vmatpush.msra.mxu1 %v2528_v33  ;;  %587 = vmatpush.msrb.mxu0 %v2482_v20  ;;  %v2630_v59 = vld [vmem:[#allocation6 + $0x48] sm:$0xff]  ;;  %v2632_v60 = vld [vmem:[#allocation6 + $0x1b0] sm:$0xff]  ;;  %v2657_v1 = vld [vmem:[#allocation6 + $0x78] sm:$0xff] }
  0x1a   :  { %2154 = vmatmul.msk.f32.gmra.mxu1 %vm71_vm0, %v2474_v18  ;;  %371 = vmatpush.msrb.mxu2 %v337_v29  ;;  %v2642_v61 = vld [vmem:[#allocation6 + $0x190] sm:$0xff]  ;;  %v2644_v62 = vld [vmem:[#allocation6 + $0x28] sm:$0xff]  ;;  %v2661_v2 = vld [vmem:[#allocation6 + $0x58] sm:$0xff] }
  0x1b   :  { %2152 = vmatmul.msk.f32.gmra.mxu3 %vm71_vm0, %v2519_v30  ;;  %2163 = vmatmul.msk.f32.gmra.mxu2 %vm71_vm0, %v2524_v31  ;;  %v2653_v63 = vld [vmem:[#allocation6 + $0x170] sm:$0xff]  ;;  %v2655_v0 = vld [vmem:[#allocation6 + $0x8] sm:$0xff]  ;;  %v2689_v10 = vld [vmem:[#allocation6 + $0x38] sm:$0xff] }
  0x1c   :  { %372 = vmatpush.msrb.mxu2 %v333_v32  ;;  %430 = vmatpush.msra.mxu3 %v2534_v34  ;;  %v2663_v3 = vld [vmem:[#allocation6 + $0x150] sm:$0xff]  ;;  %v2691_v11 = vld [vmem:[#allocation6 + $0x18] sm:$0xff] }
  0x1d   :  { %391 = vmatpush.msra.mxu1 %v2542_v36  ;;  %2146 = vmatmul.msk.f32.gmra.mxu0 %vm71_vm0, %v2474_v18  ;;  %v2675_v7 = vld [vmem:[#allocation6 + $0x110] sm:$0xff] }
  0x1e   :  { %373 = vmatpush.msrb.mxu2 %v2540_v35  ;;  %431 = vmatpush.msra.mxu3 %v2545_v37  ;;  %v2687_v8 = vld [vmem:[#allocation6 + $0xf0] sm:$0xff] }
  0x1f   :  { %392 = vmatpush.msra.mxu1 %v2550_v39  ;;  %588 = vmatpush.msrb.mxu0 %v2496_v23 }
  0x20   :  { %374 = vmatpush.msrb.mxu2 %v2547_v38  ;;  %432 = vmatpush.msra.mxu3 %v2555_v40 }
  0x21   :  { %393 = vmatpush.msra.mxu1 %v2571_v44  ;;  %589 = vmatpush.msrb.mxu0 %v2504_v26 }
  0x22   :  { %2155 = vmatmul.msk.f32.gmra.mxu1 %vm71_vm0, %v2524_v31  ;;  %375 = vmatpush.msrb.mxu2 %v2557_v41 }
  0x23   :  { %2164 = vmatmul.msk.f32.gmra.mxu2 %vm71_vm0, %v2565_v42  ;;  %2169 = vmatmul.msk.f32.vlgmr.msrb.gmra.mxu3 %vm71_vm0, %v2431_v6  ;;  %v2669_v6 = vld [vmem:[#allocation6 + $0x130] sm:$0xff] }
  0x24   :  { %376 = vmatpush.msrb.mxu2 %v2569_v43  ;;  %433 = vmatpush.msra.mxu3 %v2586_v47 }
  0x25   :  { %394 = vmatpush.msra.mxu1 %v2584_v46  ;;  %590 = vmatpush.msrb.mxu0 %v337_v29  ;;  %v2701_v29 = vld [vmem:[#allocation6 + $0xb0] sm:$0xff] }
  0x26   :  { %377 = vmatpush.msrb.mxu2 %v2582_v45  ;;  %434 = vmatpush.msra.mxu3 %v2590_v48 }
  0x27   :  { %395 = vmatpush.msra.mxu1 %v2595_v50  ;;  %591 = vmatpush.msrb.mxu0 %v333_v32  ;;  %v2718_v32 = vld [vmem:[#allocation6 + $0x70] sm:$0xff] }
  0x28   :  { %378 = vmatpush.msrb.mxu2 %v2592_v49  ;;  %435 = vmatpush.msra.mxu3 %v2618_v55 }
  0x29   :  { %396 = vmatpush.msra.mxu1 %v2607_v53  ;;  %2147 = vmatmul.msk.f32.gmra.mxu0 %vm71_vm0, %v2524_v31 }
  0x2a   :  { %2156 = vmatmul.msk.f32.gmra.mxu1 %vm71_vm0, %v2565_v42  ;;  %379 = vmatpush.msrb.mxu2 %v2600_v51 }
  0x2b   :  { %2165 = vmatmul.msk.f32.gmra.mxu2 %vm71_vm0, %v2421_v4  ;;  %2170 = vmatmul.msk.f32.gmra.mxu3 %vm71_vm0, %v2474_v18  ;;  %v2695_v18 = vld [vmem:[#allocation6 + $0xd0] sm:$0xff] }
  0x2c   :  { %380 = vmatpush.msrb.mxu2 %v2605_v52  ;;  %397 = vmatpush.msra.mxu1 %v2620_v56 }
  0x2d   :  { %436 = vmatpush.msra.mxu3 %v2626_v58  ;;  %592 = vmatpush.msrb.mxu0 %v2540_v35  ;;  %v2722_v35 = vld [vmem:[#allocation6 + $0x50] sm:$0xff] }
  0x2e   :  { %405 = vmatpush.msra.mxu2 %v2612_v54  ;;  %398 = vmatpush.msra.mxu1 %v2630_v59 }
  0x2f   :  { %593 = vmatpush.msrb.mxu0 %v2547_v38  ;;  %437 = vmatpush.msra.mxu3 %v2657_v1  ;;  %v2728_v38 = vld [vmem:[#allocation6 + $0x30] sm:$0xff] }
  0x30   :  { %406 = vmatpush.msra.mxu2 %v2623_v57  ;;  %399 = vmatpush.msra.mxu1 %v2644_v62 }
  0x31   :  { %594 = vmatpush.msrb.mxu0 %v2557_v41  ;;  %438 = vmatpush.msra.mxu3 %v2661_v2  ;;  %v2367_v41 = vmov 0.0  }
  0x32   :  { %407 = vmatpush.msra.mxu2 %v2632_v60  ;;  %2157 = vmatmul.msk.f32.gmra.mxu1 %vm71_vm0, %v2421_v4 }
  0x33   :  { %2166 = vmatmul.msk.f32.gmra.mxu2 %vm71_vm0, %v2426_v5  ;;  %2171 = vmatmul.msk.f32.gmra.mxu3 %vm71_vm0, %v2524_v31  ;;  %v2707_v31 = vld [vmem:[#allocation6 + $0x90] sm:$0xff] }
  0x34   :  { %408 = vmatpush.msra.mxu2 %v2642_v61  ;;  %400 = vmatpush.msra.mxu1 %v2655_v0 }
  0x35   :  { %595 = vmatpush.msrb.mxu0 %v2569_v43  ;;  %439 = vmatpush.msra.mxu3 %v2689_v10 }
  0x36   :  { %409 = vmatpush.msra.mxu2 %v2653_v63  ;;  %604 = vmatpush.msrb.mxu1 %v2455_v13 }
  0x37   :  { %2148 = vmatmul.msk.f32.gmra.mxu0 %vm71_vm0, %v2565_v42  ;;  %440 = vmatpush.msra.mxu3 %v2691_v11 }
  0x38   :  { %410 = vmatpush.msra.mxu2 %v2663_v3  ;;  %605 = vmatpush.msrb.mxu1 %v2460_v15 }
  0x39   :  { %596 = vmatpush.msrb.mxu0 %v2582_v45  ;;  %644 = vmatpush.msrb.mxu3 %v2462_v16 }
  0x3a   :  { %2158 = vmatmul.msk.f32.gmra.mxu1 %vm71_vm0, %v2426_v5  ;;  %411 = vmatpush.msra.mxu2 %v2669_v6 }
  0x3b   :  { %2167 = vmatmul.msk.f32.gmra.mxu2 %vm71_vm0, %v2469_v17  ;;  %2172 = vmatmul.msk.f32.gmra.mxu3 %vm71_vm0, %v2565_v42 }
  0x3c   :  { %412 = vmatpush.msra.mxu2 %v2675_v7  ;;  %606 = vmatpush.msrb.mxu1 %v2485_v21 }
  0x3d   :  { %597 = vmatpush.msrb.mxu0 %v2592_v49  ;;  %645 = vmatpush.msrb.mxu3 %v2477_v19 }
  0x3e   :  { %413 = vmatpush.msra.mxu2 %v2687_v8  ;;  %607 = vmatpush.msrb.mxu1 %v2498_v24 }
  0x3f   :  { %646 = vmatpush.msrb.mxu3 %v2490_v22  ;;  %598 = vmatpush.msrb.mxu0 %v2600_v51 }
  0x40   :  { %414 = vmatpush.msra.mxu2 %v2695_v18  ;;  %608 = vmatpush.msrb.mxu1 %v2507_v27 }
  0x41   :  { %647 = vmatpush.msrb.mxu3 %v2502_v25  ;;  %599 = vmatpush.msrb.mxu0 %v2605_v52 }
  0x42   :  { %2159 = vmatmul.msk.f32.gmra.mxu1 %vm71_vm0, %v2469_v17  ;;  %415 = vmatpush.msra.mxu2 %v2701_v29 }
  0x43   :  { %2168 = vmatmul.msk.f32.gmra.mxu2 %vm71_vm0, %v2519_v30  ;;  %2173 = vmatmul.msk.f32.gmra.mxu3 %vm71_vm0, %v2421_v4  ;;  %v2734_v4 = vld [vmem:[#allocation6 + $0x10] sm:$0xff] }
  0x44   :  { %416 = vmatpush.msra.mxu2 %v2707_v31  ;;  %609 = vmatpush.msrb.mxu1 %v2528_v33 }
  0x45   :  { %648 = vmatpush.msrb.mxu3 %v2512_v28  ;;  %804 = vmatpush.msra.mxu0 %v2441_v9 }
  0x46   :  { %417 = vmatpush.msra.mxu2 %v2718_v32  ;;  %610 = vmatpush.msrb.mxu1 %v2542_v36 }
  0x47   :  { %649 = vmatpush.msrb.mxu3 %v2534_v34  ;;  %805 = vmatpush.msra.mxu0 %v2453_v12 }
  0x48   :  { %418 = vmatpush.msra.mxu2 %v2722_v35  ;;  %611 = vmatpush.msrb.mxu1 %v2550_v39 }
  0x49   :  { %650 = vmatpush.msrb.mxu3 %v2545_v37  ;;  %806 = vmatpush.msra.mxu0 %v2458_v14  ;;  %v61_v14 = vld [vmem:[%s3761_s3] sm:$0xf] }
  0x4a   :  { %2160 = vmatmul.msk.f32.gmra.mxu1 %vm71_vm0, %v2519_v30  ;;  %419 = vmatpush.msra.mxu2 %v2728_v38 }
  0x4b   :  { %2174 = vmatmul.msk.f32.gmra.mxu3 %vm71_vm0, %v2426_v5  ;;  %381 = vmatmul.f32.vlgmr.msrb.gmra.mxu2 %v2367_v41 }
  0x4c   :  { %420 = vmatpush.msra.mxu2 %v2734_v4  ;;  %612 = vmatpush.msrb.mxu1 %v2571_v44 }
  0x4d   :  { %651 = vmatpush.msrb.mxu3 %v2555_v40  ;;  %807 = vmatpush.msra.mxu0 %v2482_v20 }
  0x4e   :  { %624 = vmatpush.msrb.mxu2 %v2612_v54  ;;  %613 = vmatpush.msrb.mxu1 %v2584_v46 }
  0x4f   :  { %652 = vmatpush.msrb.mxu3 %v2586_v47  ;;  %808 = vmatpush.msra.mxu0 %v2496_v23 }
  0x50   :  { %625 = vmatpush.msrb.mxu2 %v2623_v57  ;;  %614 = vmatpush.msrb.mxu1 %v2595_v50 }
  0x51   :  { %653 = vmatpush.msrb.mxu3 %v2590_v48  ;;  %809 = vmatpush.msra.mxu0 %v2504_v26 }
  0x52   :  { %626 = vmatpush.msrb.mxu2 %v2632_v60  ;;  %401 = vmatmul.f32.vlgmr.msra.gmra.mxu1 %v2367_v41 }
  0x53   :  { %2175 = vmatmul.msk.f32.gmra.mxu3 %vm71_vm0, %v2469_v17  ;;  %421 = vmatmul.f32.vlgmr.msra.gmra.mxu2 %v2367_v41 }
  0x54   :  { %627 = vmatpush.msrb.mxu2 %v2642_v61  ;;  %615 = vmatpush.msrb.mxu1 %v2607_v53 }
  0x55   :  { %654 = vmatpush.msrb.mxu3 %v2618_v55 }
  0x56   :  { %628 = vmatpush.msrb.mxu2 %v2653_v63  ;;  %616 = vmatpush.msrb.mxu1 %v2620_v56 }
  0x57   :  { %655 = vmatpush.msrb.mxu3 %v2626_v58 }
  0x58   :  { %629 = vmatpush.msrb.mxu2 %v2663_v3  ;;  %617 = vmatpush.msrb.mxu1 %v2630_v59 }
  0x59   :  { %656 = vmatpush.msrb.mxu3 %v2657_v1 }
  0x5a   :  { %630 = vmatpush.msrb.mxu2 %v2669_v6  ;;  %618 = vmatpush.msrb.mxu1 %v2644_v62 }
  0x5b   :  { %2176 = vmatmul.msk.f32.gmra.mxu3 %vm71_vm0, %v2519_v30 }
  0x5c   :  { %631 = vmatpush.msrb.mxu2 %v2675_v7  ;;  %657 = vmatpush.msrb.mxu3 %v2661_v2 }
  0x5d   :  { %619 = vmatpush.msrb.mxu1 %v2655_v0 }
  0x5e   :  { %632 = vmatpush.msrb.mxu2 %v2687_v8  ;;  %658 = vmatpush.msrb.mxu3 %v2689_v10 }
  0x5f   :  { %824 = vmatpush.msra.mxu1 %v2455_v13 }
  0x60   :  { %633 = vmatpush.msrb.mxu2 %v2695_v18  ;;  %659 = vmatpush.msrb.mxu3 %v2691_v11 }
  0x61   :  { %825 = vmatpush.msra.mxu1 %v2460_v15  ;;  %v2845_v15 = vperm.slane %v61_v14, 2 }
  0x62   :  { %634 = vmatpush.msrb.mxu2 %v2701_v29 }
  0x63   :  { %441 = vmatmul.f32.vlgmr.msra.gmra.mxu3 %v2367_v41  ;;  %826 = vmatpush.msra.mxu1 %v2485_v21 }
  0x64   :  { %635 = vmatpush.msrb.mxu2 %v2707_v31  ;;  %864 = vmatpush.msra.mxu3 %v2462_v16  ;;  %v64_v16 = vperm.slane %v61_v14, 1 }
  0x65   :  { %827 = vmatpush.msra.mxu1 %v2498_v24 }
  0x66   :  { %636 = vmatpush.msrb.mxu2 %v2718_v32  ;;  %865 = vmatpush.msra.mxu3 %v2477_v19 }
  0x67   :  { %828 = vmatpush.msra.mxu1 %v2507_v27 }
  0x68   :  { %637 = vmatpush.msrb.mxu2 %v2722_v35  ;;  %866 = vmatpush.msra.mxu3 %v2490_v22 }
  0x69   :  { %829 = vmatpush.msra.mxu1 %v2528_v33 }
  0x6a   :  { %638 = vmatpush.msrb.mxu2 %v2728_v38  ;;  %867 = vmatpush.msra.mxu3 %v2502_v25 }
  0x6b   :  { %830 = vmatpush.msra.mxu1 %v2542_v36 }
  0x6c   :  { %639 = vmatpush.msrb.mxu2 %v2734_v4  ;;  %868 = vmatpush.msra.mxu3 %v2512_v28 }
  0x6d   :  { %831 = vmatpush.msra.mxu1 %v2550_v39 }
  0x6e   :  { %844 = vmatpush.msra.mxu2 %v2612_v54  ;;  %869 = vmatpush.msra.mxu3 %v2534_v34 }
  0x6f   :  { %832 = vmatpush.msra.mxu1 %v2571_v44 }
  0x70   :  { %845 = vmatpush.msra.mxu2 %v2623_v57  ;;  %870 = vmatpush.msra.mxu3 %v2545_v37  ;;  %v66_v37 = vperm.slane %v61_v14, 3 }
  0x71   :  { %833 = vmatpush.msra.mxu1 %v2584_v46 }
  0x72   :  { %846 = vmatpush.msra.mxu2 %v2632_v60  ;;  %871 = vmatpush.msra.mxu3 %v2555_v40 }
  0x73   :  { %834 = vmatpush.msra.mxu1 %v2595_v50 }
  0x74   :  { %847 = vmatpush.msra.mxu2 %v2642_v61  ;;  %872 = vmatpush.msra.mxu3 %v2586_v47 }
  0x75   :  { %835 = vmatpush.msra.mxu1 %v2607_v53 }
  0x76   :  { %848 = vmatpush.msra.mxu2 %v2653_v63  ;;  %873 = vmatpush.msra.mxu3 %v2590_v48 }
  0x77   :  { %836 = vmatpush.msra.mxu1 %v2620_v56 }
  0x78   :  { %849 = vmatpush.msra.mxu2 %v2663_v3  ;;  %874 = vmatpush.msra.mxu3 %v2618_v55 }
  0x79   :  { %837 = vmatpush.msra.mxu1 %v2630_v59 }
  0x7a   :  { %850 = vmatpush.msra.mxu2 %v2669_v6  ;;  %875 = vmatpush.msra.mxu3 %v2626_v58 }
  0x7b   :  { %838 = vmatpush.msra.mxu1 %v2644_v62 }
  0x7c   :  { %851 = vmatpush.msra.mxu2 %v2675_v7  ;;  %876 = vmatpush.msra.mxu3 %v2657_v1  ;;  %v2894_v1 = vperm.slane %v61_v14, 0 }
  0x7d   :  { %839 = vmatpush.msra.mxu1 %v2655_v0 }
  0x7e   :  { %852 = vmatpush.msra.mxu2 %v2687_v8  ;;  %877 = vmatpush.msra.mxu3 %v2661_v2  ;;  %3819 = vst [vmem:[#allocation25_spill] sm:$0xff] %v2894_v1 }
  0x80   :  { %853 = vmatpush.msra.mxu2 %v2695_v18  ;;  %878 = vmatpush.msra.mxu3 %v2689_v10 }
  0x82   :  { %854 = vmatpush.msra.mxu2 %v2701_v29  ;;  %879 = vmatpush.msra.mxu3 %v2691_v11 }
  0x84   :  { %855 = vmatpush.msra.mxu2 %v2707_v31 }
  0x86   :  { %856 = vmatpush.msra.mxu2 %v2718_v32  ;;  %v2833_v5 = vpop.f32.mrf.mxu1 }
  0x87   :  { %3803 = vst [vmem:[#allocation9_spill] sm:$0xff] %v2833_v5 }
  0x88   :  { %857 = vmatpush.msra.mxu2 %v2722_v35 }
  0x8a   :  { %858 = vmatpush.msra.mxu2 %v2728_v38 }
  0x8b   :  { %v113_v0 = vpop.f32.mrf.mxu0 }
  0x8c   :  { %859 = vmatpush.msra.mxu2 %v2734_v4  ;;  %v114_v2 = vadd.f32 %v113_v0, %v2894_v1 }
  0x8d   :  { %v2838_v9 = vpop.f32.mrf.mxu3  ;;  %v2840_v12 = vpop.f32.mrf.mxu2 }
  0x8e   :  { %3804 = vst [vmem:[#allocation10_spill] sm:$0xff] %v2838_v9 }
  0x8f   :  { %v154_v13 = vpop.f32.mrf.mxu1 }
  0x90   :  { %v155_v3 = vadd.f32 %v154_v13, %v64_v16 }
  0x95   :  { %v2847_v17 = vpop.f32.mrf.mxu3 }
  0x96   :  { %3805 = vst [vmem:[#allocation11_spill] sm:$0xff] %v2847_v17  ;;  %v198_v19 = vpop.f32.mrf.mxu2 }
  0x97   :  { %v2850_v20 = vadd.f32 %v198_v19, %v2845_v15  ;;  %v157_v21 = vpop.f32.mrf.mxu1 }
  0x98   :  { %v2852_v22 = vadd.f32 %v157_v21, %v64_v16 }
  0x9e   :  { %v2854_v23 = vpop.f32.mrf.mxu3  ;;  %v201_v24 = vpop.f32.mrf.mxu2 }
  0x9f   :  { %3806 = vst [vmem:[#allocation12_spill] sm:$0xff] %v2854_v23  ;;  %v2857_v25 = vadd.f32 %v201_v24, %v2845_v15  ;;  %v160_v26 = vpop.f32.mrf.mxu1  ;;  %v3054_v23 = vld [vmem:[#allocation6 + $0x118] sm:$0xff] }
  0xa0   :  { %v2859_v27 = vadd.f32 %v160_v26, %v64_v16 }
  0xa6   :  { %v204_v28 = vpop.f32.mrf.mxu2  ;;  %v236_v30 = vpop.f32.mrf.mxu3 }
  0xa7   :  { %v2862_v33 = vadd.f32 %v204_v28, %v2845_v15  ;;  %v163_v34 = vpop.f32.mrf.mxu1  ;;  %v237_v28 = vadd.f32 %v236_v30, %v66_v37 }
  0xa8   :  { %v2864_v36 = vadd.f32 %v163_v34, %v64_v16 }
  0xa9   :  { %3807 = vst [vmem:[#allocation13_spill] sm:$0xff] %v2862_v33 }
  0xaa   :  { %3808 = vst [vmem:[#allocation14_spill] sm:$0xff] %v2864_v36 }
  0xae   :  { %v207_v39 = vpop.f32.mrf.mxu2  ;;  %v239_v40 = vpop.f32.mrf.mxu3 }
  0xaf   :  { %v2867_v42 = vadd.f32 %v207_v39, %v2845_v15  ;;  %v2869_v43 = vadd.f32 %v239_v40, %v66_v37  ;;  %v166_v44 = vpop.f32.mrf.mxu1 }
  0xb0   :  { %v2871_v45 = vadd.f32 %v166_v44, %v64_v16 }
  0xb1   :  { %3809 = vst [vmem:[#allocation15_spill] sm:$0xff] %v2867_v42 }
  0xb2   :  { %3810 = vst [vmem:[#allocation16_spill] sm:$0xff] %v2871_v45  ;;  %v3087_v45 = vld [vmem:[#allocation6 + $0xb8] sm:$0xff] }
  0xb6   :  { %v210_v46 = vpop.f32.mrf.mxu2  ;;  %v242_v47 = vpop.f32.mrf.mxu3 }
  0xb7   :  { %v2874_v48 = vadd.f32 %v210_v46, %v2845_v15  ;;  %v2876_v49 = vadd.f32 %v242_v47, %v66_v37  ;;  %v169_v50 = vpop.f32.mrf.mxu1 }
  0xb8   :  { %v2878_v51 = vadd.f32 %v169_v50, %v64_v16 }
  0xb9   :  { %3811 = vst [vmem:[#allocation17_spill] sm:$0xff] %v2874_v48  ;;  %v3072_v48 = vld [vmem:[#allocation6 + $0xc8] sm:$0xff] }
  0xba   :  { %3812 = vst [vmem:[#allocation18_spill] sm:$0xff] %v2878_v51  ;;  %v3076_v51 = vld [vmem:[#allocation6 + $0xd8] sm:$0xff] }
  0xbe   :  { %v213_v52 = vpop.f32.mrf.mxu2  ;;  %v245_v53 = vpop.f32.mrf.mxu3 }
  0xbf   :  { %v2881_v54 = vadd.f32 %v213_v52, %v2845_v15  ;;  %v2883_v55 = vadd.f32 %v245_v53, %v66_v37  ;;  %v172_v56 = vpop.f32.mrf.mxu1  ;;  %v196_v53 = vadd.f32 %v2840_v12, %v2845_v15 }
  0xc0   :  { %v2885_v57 = vadd.f32 %v172_v56, %v64_v16 }
  0xc1   :  { %3813 = vst [vmem:[#allocation19_spill] sm:$0xff] %v2881_v54  ;;  %v3064_v54 = vld [vmem:[#allocation6 + $0xf8] sm:$0xff] }
  0xc2   :  { %3814 = vst [vmem:[#allocation20_spill] sm:$0xff] %v2883_v55  ;;  %v3109_v55 = vld [vmem:[#allocation6 + $0x48] sm:$0xff] }
  0xc3   :  { %3815 = vst [vmem:[#allocation21_spill] sm:$0xff] %v2885_v57 }
  0xc4   :  { %3846 = vst [vmem:[#allocation50_spill] sm:$0xff] %v3109_v55 }
  0xc6   :  { %v216_v58 = vpop.f32.mrf.mxu2  ;;  %v248_v59 = vpop.f32.mrf.mxu3 }
  0xc7   :  { %v2888_v60 = vadd.f32 %v216_v58, %v2845_v15  ;;  %v2890_v61 = vadd.f32 %v248_v59, %v66_v37  ;;  %v175_v62 = vpop.f32.mrf.mxu1 }
  0xc8   :  { %v2892_v63 = vadd.f32 %v175_v62, %v64_v16 }
  0xc9   :  { %3816 = vst [vmem:[#allocation22_spill] sm:$0xff] %v2888_v60  ;;  %v3044_v60 = vld [vmem:[#allocation6 + $0x138] sm:$0xff] }
  0xca   :  { %3817 = vst [vmem:[#allocation23_spill] sm:$0xff] %v2890_v61  ;;  %v3085_v61 = vld [vmem:[#allocation6 + $0xb0] sm:$0xff] }
  0xcb   :  { %3818 = vst [vmem:[#allocation24_spill] sm:$0xff] %v2892_v63  ;;  %v3052_v63 = vld [vmem:[#allocation6 + $0x110] sm:$0xff] }
  0xcc   :  { %3841 = vst [vmem:[#allocation45_spill] sm:$0xff] %v3044_v60 }
  0xce   :  { %v251_v6 = vpop.f32.mrf.mxu3  ;;  %v382_v7 = vpop.f32.mrf.mxu2 }
  0xcf   :  { %v2897_v8 = vadd.f32 %v251_v6, %v66_v37  ;;  %v445_v10 = vadd.f32 %v382_v7, %v114_v2  ;;  %v402_v11 = vpop.f32.mrf.mxu1 }
  0xd0   :  { %v446_v18 = vadd.f32 %v402_v11, %v155_v3 }
  0xd1   :  { %3820 = vst [vmem:[#allocation26_spill] sm:$0xff] %v2897_v8  ;;  %v2177_v29 = vmul.f32 -1.442695, %v445_v10  ;;  %v3074_v8 = vld [vmem:[#allocation6 + $0xd0] sm:$0xff] }
  0xd2   :  { %v2178_v31 = vmul.f32 -1.442695, %v446_v18 }
  0xd3   :  { %2210 = vpow2.f32 %v2177_v29 }
  0xd4   :  { %2212 = vpow2.f32 %v2178_v31 }
  0xd6   :  { %v254_v32 = vpop.f32.mrf.mxu3  ;;  %v422_v50 = vpop.f32.mrf.mxu2 }
  0xd7   :  { %v2899_v35 = vadd.f32 %v254_v32, %v66_v37  ;;  %v447_v59 = vadd.f32 %v422_v50, %v196_v53  ;;  %v2924_v50 = vld [vmem:[#allocation6 + $0x120] sm:$0xff] }
  0xd8   :  { %810 = vmatpush.msra.mxu0 %v2924_v50  ;;  %v2930_v53 = vld [vmem:[#allocation6 + $0xe0] sm:$0xff] }
  0xd9   :  { %3821 = vst [vmem:[#allocation27_spill] sm:$0xff] %v2899_v35  ;;  %v2211_v38 = vpop.eup %2210 }
  0xda   :  { %v2213_v4 = vpop.eup %2212  ;;  %v452_v41 = vadd.f32 1.0, %v2211_v38 }
  0xdb   :  { %v471_v14 = vadd.f32 1.0, %v2213_v4 }
  0xdc   :  { %2214 = vrcp.f32 %v452_v41  ;;  %vm458_vm1 = vweird.f32 %v452_v41  ;;  %v464_v62 = vand.u32 2147483648, %v452_v41  ;;  %v462_v0 = vand.u32 2147483647, %v452_v41 }
  0xdd   :  { %2216 = vrcp.f32 %v471_v14  ;;  %v483_v58 = vand.u32 2147483648, %v471_v14  ;;  %vm477_vm4 = vweird.f32 %v471_v14  ;;  %v481_v2 = vand.u32 2147483647, %v471_v14 }
  0xde   :  { %v257_v13 = vpop.f32.mrf.mxu3  ;;  %v465_v15 = vor.u32 1.1754944e-38, %v464_v62  ;;  %vm463_vm7 = vcmp.eq.f32.partialorder %v462_v0, 8.507059e+37  ;;  %v2934_v62 = vld [vmem:[#allocation6 + $0xc0] sm:$0xff] }
  0xdf   :  { %v2901_v16 = vadd.f32 %v257_v13, %v66_v37  ;;  %v484_v12 = vor.u32 1.1754944e-38, %v483_v58  ;;  %vm482_vm8 = vcmp.eq.f32.partialorder %v481_v2, 8.507059e+37  ;;  %v2938_v0 = vld [vmem:[#allocation6 + $0xa0] sm:$0xff] }
  0xe1   :  { %3822 = vst [vmem:[#allocation28_spill] sm:$0xff] %v2901_v16  ;;  %v3050_v16 = vld [vmem:[#allocation6 + $0x108] sm:$0xff] }
  0xe2   :  { %v2215_v19 = vpop.eup %2214 }
  0xe3   :  { %v2217_v21 = vpop.eup %2216  ;;  %v454_v24 = vmul.f32 %v2215_v19, %v452_v41  ;;  %vm459_vm2 = vweird.f32 %v2215_v19 }
  0xe4   :  { %v473_v26 = vmul.f32 %v2217_v21, %v471_v14  ;;  %vm478_vm3 = vweird.f32 %v2217_v21  ;;  %vm2905_vm5 = vmor %vm458_vm1, %vm459_vm2 }
  0xe5   :  { %v455_v34 = vsub.f32 1.0, %v454_v24  ;;  %vm479_vm6 = vmor %vm477_vm4, %vm478_vm3 }
  0xe6   :  { %v474_v39 = vsub.f32 1.0, %v473_v26  ;;  %v442_v40 = vpop.f32.mrf.mxu3 }
  0xe7   :  { %v448_v44 = vadd.f32 %v442_v40, %v237_v28  ;;  %v456_v52 = vmul.f32 %v2215_v19, %v455_v34 }
  0xe8   :  { %v475_v46 = vmul.f32 %v2217_v21, %v474_v39 }
  0xe9   :  { %v2179_v47 = vmul.f32 -1.442695, %v448_v44  ;;  %v457_v30 = vadd.f32 %v2215_v19, %v456_v52  ;;  %v116_v44 = vpop.f32.mrf.mxu0  ;;  %v2927_v52 = vld [vmem:[#allocation6 + $0x100] sm:$0xff] }
  0xea   :  { %v476_v56 = vadd.f32 %v2217_v21, %v475_v46  ;;  %811 = vmatpush.msra.mxu0 %v2927_v52 }
  0xeb   :  { %2218 = vpow2.f32 %v2179_v47  ;;  %v461_v7 = vsel %vm2905_vm5, %v2215_v19, %v457_v30 }
  0xec   :  { %v480_v3 = vsel %vm479_vm6, %v2217_v21, %v476_v56  ;;  %2220 = vtanh.f32 %v447_v59  ;;  %v466_v18 = vsel %vm463_vm7, %v465_v15, %v461_v7  ;;  %v117_v56 = vadd.f32 %v116_v44, %v2894_v1  ;;  %812 = vmatpush.msra.mxu0 %v2930_v53  ;;  %v2946_v15 = vld [vmem:[#allocation6 + $0x40] sm:$0xff] }
  0xed   :  { %v485_v11 = vsel %vm482_vm8, %v484_v12, %v480_v3  ;;  %v2943_v12 = vld [vmem:[#allocation6 + $0x60] sm:$0xff]  ;;  %3828 = vst [vmem:[#allocation32_spill] sm:$0xff] %v2946_v15 }
  0xee   :  { %v507_v29 = vmul.f32 0.0, %v485_v11  ;;  %813 = vmatpush.msra.mxu0 %v2934_v62  ;;  %3827 = vst [vmem:[#allocation31_spill] sm:$0xff] %v2943_v12 }
  0xf0   :  { %814 = vmatpush.msra.mxu0 %v2938_v0 }
  0xf1   :  { %v2219_v6 = vpop.eup %2218  ;;  %v2920_v46 = vpop.f32.mrf.mxu0 }
  0xf2   :  { %v491_v10 = vadd.f32 1.0, %v2219_v6  ;;  %v2221_v31 = vpop.eup %2220  ;;  %v2941_v6 = vld [vmem:[#allocation6 + $0x80] sm:$0xff]  ;;  %v120_v35 = vadd.f32 %v2920_v46, %v2894_v1  ;;  %v3083_v46 = vld [vmem:[#allocation6 + $0xa8] sm:$0xff] }
  0xf3   :  { %v508_v32 = vmul.f32 %v2221_v31, %v466_v18  ;;  %815 = vmatpush.msra.mxu0 %v2941_v6  ;;  %v2953_v18 = vld [vmem:[#allocation6] sm:$0xff] }
  0xf4   :  { %2222 = vrcp.f32 %v491_v10  ;;  %v503_v13 = vand.u32 2147483648, %v491_v10  ;;  %v501_v19 = vand.u32 2147483647, %v491_v10  ;;  %vm497_vm10 = vweird.f32 %v491_v10 }
  0xf5   :  { %v2911_v4 = vadd.f32 %v508_v32, %v507_v29  ;;  %816 = vmatpush.msra.mxu0 %v2943_v12 }
  0xf6   :  { %v504_v26 = vor.u32 1.1754944e-38, %v503_v13  ;;  %vm502_vm12 = vcmp.eq.f32.partialorder %v501_v19, 8.507059e+37 }
  0xf7   :  { %2224 = vtanh.f32 %v2911_v4  ;;  %817 = vmatpush.msra.mxu0 %v2946_v15 }
  0xf9   :  { %v2922_v47 = vpop.f32.mrf.mxu0 }
  0xfa   :  { %v2223_v38 = vpop.eup %2222  ;;  %3826 = vst [vmem:[#allocation30_spill] sm:$0xff] %v2922_v47  ;;  %v3115_v47 = vld [vmem:[#allocation6 + $0x58] sm:$0xff] }
  0xfb   :  { %v493_v41 = vmul.f32 %v2223_v38, %v491_v10  ;;  %vm498_vm9 = vweird.f32 %v2223_v38  ;;  %v2950_v10 = vld [vmem:[#allocation6 + $0x20] sm:$0xff] }
  0xfc   :  { %vm499_vm11 = vmor %vm497_vm10, %vm498_vm9  ;;  %818 = vmatpush.msra.mxu0 %v2950_v10 }
  0xfd   :  { %v494_v14 = vsub.f32 1.0, %v493_v41  ;;  %v2225_v34 = vpop.eup %2224 }
  0xfe   :  { %819 = vmatpush.msra.mxu0 %v2953_v18 }
  0xff   :  { %v495_v21 = vmul.f32 %v2223_v38, %v494_v14 }
 0x101   :  { %v496_v24 = vadd.f32 %v2223_v38, %v495_v21 }
 0x103   :  { %v500_v28 = vsel %vm499_vm11, %v2223_v38, %v496_v24 }
 0x104   :  { %v505_v39 = vsel %vm502_vm12, %v504_v26, %v500_v28 }
 0x105   :  { %v2914_v40 = vmul.f32 %v2225_v34, %v505_v39 }
 0x107   :  { %3825 = vst [vmem:[#allocation29_spill] sm:$0xff] %v2914_v40  ;;  %600 = vmatmul.f32.vlgmr.msrb.gmra.mxu0 %v2914_v40  ;;  %620 = vmatmul.f32.vlgmr.msrb.gmra.mxu1 %v2914_v40 }
 0x108   :  { %640 = vmatmul.f32.vlgmr.msrb.gmra.mxu2 %v2914_v40  ;;  %660 = vmatmul.f32.vlgmr.msrb.gmra.mxu3 %v2914_v40  ;;  %v3062_v40 = vld [vmem:[#allocation6 + $0xf0] sm:$0xff] }
 0x184   :  { %v601_v58 = vpop.f32.mrf.mxu0  ;;  %v621_v59 = vpop.f32.mrf.mxu1 }
 0x185   :  { %v664_v30 = vadd.f32 %v601_v58, %v117_v56  ;;  %v665_v37 = vadd.f32 %v621_v59, %v2852_v22 }
 0x187   :  { %v2180_v2 = vmul.f32 -1.442695, %v664_v30  ;;  %v2181_v3 = vmul.f32 -1.442695, %v665_v37 }
 0x189   :  { %2226 = vpow2.f32 %v2180_v2 }
 0x18a   :  { %2228 = vpow2.f32 %v2181_v3 }
 0x18b   :  { %v661_v7 = vpop.f32.mrf.mxu3  ;;  %v641_v41 = vpop.f32.mrf.mxu2 }
 0x18c   :  { %v667_v22 = vadd.f32 %v661_v7, %v2869_v43  ;;  %v666_v21 = vadd.f32 %v641_v41, %v2850_v20 }
 0x18e   :  { %v2182_v11 = vmul.f32 -1.442695, %v667_v22 }
 0x18f   :  { %v2227_v29 = vpop.eup %2226 }
 0x190   :  { %v2229_v31 = vpop.eup %2228  ;;  %v671_v32 = vadd.f32 1.0, %v2227_v29  ;;  %2230 = vpow2.f32 %v2182_v11 }
 0x191   :  { %v690_v38 = vadd.f32 1.0, %v2229_v31 }
 0x192   :  { %2232 = vrcp.f32 %v671_v32  ;;  %v683_v39 = vand.u32 2147483648, %v671_v32  ;;  %v681_v58 = vand.u32 2147483647, %v671_v32  ;;  %vm677_vm15 = vweird.f32 %v671_v32 }
 0x193   :  { %2234 = vrcp.f32 %v690_v38  ;;  %v702_v44 = vand.u32 2147483648, %v690_v38  ;;  %v700_v30 = vand.u32 2147483647, %v690_v38  ;;  %vm696_vm0 = vweird.f32 %v690_v38 }
 0x194   :  { %v684_v20 = vor.u32 1.1754944e-38, %v683_v39  ;;  %vm682_vm3 = vcmp.eq.f32.partialorder %v681_v58, 8.507059e+37 }
 0x195   :  { %v703_v22 = vor.u32 1.1754944e-38, %v702_v44  ;;  %vm701_vm4 = vcmp.eq.f32.partialorder %v700_v30, 8.507059e+37  ;;  %v2976_v30 = vld [vmem:[#allocation6 + $0x1f8] sm:$0xff] }
 0x196   :  { %v2231_v43 = vpop.eup %2230  ;;  %1084 = vmatpush.msrb.mxu3 %v2976_v30 }
 0x197   :  { %v710_v14 = vadd.f32 1.0, %v2231_v43 }
 0x198   :  { %v2233_v13 = vpop.eup %2232 }
 0x199   :  { %v2235_v19 = vpop.eup %2234  ;;  %v673_v24 = vmul.f32 %v2233_v13, %v671_v32  ;;  %2236 = vrcp.f32 %v710_v14  ;;  %vm678_vm13 = vweird.f32 %v2233_v13  ;;  %vm716_vm6 = vweird.f32 %v710_v14 }
 0x19a   :  { %v692_v26 = vmul.f32 %v2235_v19, %v690_v38  ;;  %2238 = vtanh.f32 %v666_v21  ;;  %vm697_vm14 = vweird.f32 %v2235_v19  ;;  %vm679_vm1 = vmor %vm677_vm15, %vm678_vm13 }
 0x19b   :  { %v674_v28 = vsub.f32 1.0, %v673_v24  ;;  %vm698_vm2 = vmor %vm696_vm0, %vm697_vm14 }
 0x19c   :  { %v693_v34 = vsub.f32 1.0, %v692_v26 }
 0x19d   :  { %v675_v56 = vmul.f32 %v2233_v13, %v674_v28 }
 0x19e   :  { %v694_v59 = vmul.f32 %v2235_v19, %v693_v34  ;;  %v722_v34 = vand.u32 2147483648, %v710_v14 }
 0x19f   :  { %v2237_v37 = vpop.eup %2236  ;;  %v676_v2 = vadd.f32 %v2233_v13, %v675_v56 }
 0x1a0   :  { %v695_v3 = vadd.f32 %v2235_v19, %v694_v59  ;;  %v712_v7 = vmul.f32 %v2237_v37, %v710_v14  ;;  %v2239_v29 = vpop.eup %2238  ;;  %vm717_vm5 = vweird.f32 %v2237_v37  ;;  %v723_v44 = vor.u32 1.1754944e-38, %v722_v34  ;;  %v2970_v59 = vld [vmem:[#allocation6 + $0x1e8] sm:$0xff]  ;;  %v3028_v34 = vld [vmem:[#allocation6 + $0x140] sm:$0xff] }
 0x1a1   :  { %v680_v11 = vsel %vm679_vm1, %v2233_v13, %v676_v2  ;;  %v720_v13 = vand.u32 2147483647, %v710_v14  ;;  %vm718_vm7 = vmor %vm716_vm6, %vm717_vm5  ;;  %3830 = vst [vmem:[#allocation34_spill] sm:$0xff] %v2970_v59  ;;  %v2972_v14 = vld [vmem:[#allocation6 + $0x1f0] sm:$0xff]  ;;  %1044 = vmatpush.msrb.mxu1 %v2970_v59  ;;  %v2982_v2 = vld [vmem:[#allocation6 + $0x1c8] sm:$0xff] }
 0x1a2   :  { %v685_v31 = vsel %vm682_vm3, %v684_v20, %v680_v11  ;;  %v699_v41 = vsel %vm698_vm2, %v2235_v19, %v695_v3  ;;  %v713_v43 = vsub.f32 1.0, %v712_v7  ;;  %3831 = vst [vmem:[#allocation35_spill] sm:$0xff] %v2972_v14  ;;  %1064 = vmatpush.msrb.mxu2 %v2972_v14  ;;  %v2984_v20 = vld [vmem:[#allocation6 + $0x1d0] sm:$0xff]  ;;  %v2988_v3 = vld [vmem:[#allocation6 + $0x1d8] sm:$0xff]  ;;  %v2992_v7 = vld [vmem:[#allocation6 + $0x1a0] sm:$0xff] }
 0x1a3   :  { %v704_v21 = vsel %vm701_vm4, %v703_v22, %v699_v41  ;;  %v727_v24 = vmul.f32 %v2239_v29, %v685_v31  ;;  %vm721_vm8 = vcmp.eq.f32.partialorder %v720_v13, 8.507059e+37  ;;  %3833 = vst [vmem:[#allocation37_spill] sm:$0xff] %v2982_v2  ;;  %1045 = vmatpush.msrb.mxu1 %v2982_v2  ;;  %1085 = vmatpush.msrb.mxu3 %v2988_v3  ;;  %v2994_v22 = vld [vmem:[#allocation6 + $0x1a8] sm:$0xff]  ;;  %v2996_v11 = vld [vmem:[#allocation6 + $0x1b0] sm:$0xff]  ;;  %v3000_v29 = vld [vmem:[#allocation6 + $0x1b8] sm:$0xff] }
 0x1a4   :  { %v726_v26 = vmul.f32 %v704_v21, %v2911_v4  ;;  %v714_v28 = vmul.f32 %v2237_v37, %v713_v43  ;;  %v2968_v4 = vld [vmem:[#allocation6 + $0x1e0] sm:$0xff]  ;;  %1065 = vmatpush.msrb.mxu2 %v2984_v20  ;;  %3834 = vst [vmem:[#allocation38_spill] sm:$0xff] %v3000_v29  ;;  %v3006_v41 = vld [vmem:[#allocation6 + $0x188] sm:$0xff]  ;;  %v3008_v43 = vld [vmem:[#allocation6 + $0x190] sm:$0xff] }
 0x1a5   :  { %1024 = vmatpush.msrb.mxu0 %v2968_v4  ;;  %1046 = vmatpush.msrb.mxu1 %v2994_v22  ;;  %v3004_v31 = vld [vmem:[#allocation6 + $0x180] sm:$0xff]  ;;  %3836 = vst [vmem:[#allocation40_spill] sm:$0xff] %v3006_v41  ;;  %v3012_v21 = vld [vmem:[#allocation6 + $0x198] sm:$0xff]  ;;  %v3030_v13 = vld [vmem:[#allocation6 + $0x148] sm:$0xff] }
 0x1a6   :  { %v2959_v32 = vadd.f32 %v727_v24, %v726_v26  ;;  %v715_v38 = vadd.f32 %v2237_v37, %v714_v28  ;;  %1066 = vmatpush.msrb.mxu2 %v2996_v11  ;;  %1086 = vmatpush.msrb.mxu3 %v3000_v29  ;;  %3835 = vst [vmem:[#allocation39_spill] sm:$0xff] %v3004_v31  ;;  %v3016_v24 = vld [vmem:[#allocation6 + $0x160] sm:$0xff]  ;;  %v3018_v26 = vld [vmem:[#allocation6 + $0x168] sm:$0xff]  ;;  %v3020_v28 = vld [vmem:[#allocation6 + $0x170] sm:$0xff] }
 0x1a7   :  { %3837 = vst [vmem:[#allocation41_spill] sm:$0xff] %v3008_v43  ;;  %1047 = vmatpush.msrb.mxu1 %v3006_v41 }
 0x1a8   :  { %2240 = vtanh.f32 %v2959_v32  ;;  %v719_v39 = vsel %vm718_vm7, %v2237_v37, %v715_v38  ;;  %v2980_v37 = vld [vmem:[#allocation6 + $0x1c0] sm:$0xff]  ;;  %1067 = vmatpush.msrb.mxu2 %v3008_v43  ;;  %1087 = vmatpush.msrb.mxu3 %v3012_v21  ;;  %v3024_v38 = vld [vmem:[#allocation6 + $0x178] sm:$0xff] }
 0x1a9   :  { %v724_v56 = vsel %vm721_vm8, %v723_v44, %v719_v39  ;;  %3832 = vst [vmem:[#allocation36_spill] sm:$0xff] %v2980_v37  ;;  %1025 = vmatpush.msrb.mxu0 %v2980_v37  ;;  %1048 = vmatpush.msrb.mxu1 %v3018_v26  ;;  %v3032_v39 = vld [vmem:[#allocation6 + $0x150] sm:$0xff]  ;;  %v3036_v44 = vld [vmem:[#allocation6 + $0x158] sm:$0xff] }
 0x1aa   :  { %3838 = vst [vmem:[#allocation42_spill] sm:$0xff] %v3024_v38  ;;  %1068 = vmatpush.msrb.mxu2 %v3020_v28  ;;  %1088 = vmatpush.msrb.mxu3 %v3024_v38 }
 0x1ab   :  { %1026 = vmatpush.msrb.mxu0 %v2992_v7  ;;  %3839 = vst [vmem:[#allocation43_spill] sm:$0xff] %v3032_v39  ;;  %1049 = vmatpush.msrb.mxu1 %v3030_v13 }
 0x1ac   :  { %1069 = vmatpush.msrb.mxu2 %v3032_v39  ;;  %1089 = vmatpush.msrb.mxu3 %v3036_v44 }
 0x1ad   :  { %1027 = vmatpush.msrb.mxu0 %v3004_v31 }
 0x1ae   :  { %v2241_v19 = vpop.eup %2240  ;;  %1090 = vmatpush.msrb.mxu3 %v3044_v60 }
 0x1af   :  { %v2962_v58 = vmul.f32 %v2241_v19, %v724_v56  ;;  %1028 = vmatpush.msrb.mxu0 %v3016_v24  ;;  %v3040_v19 = vld [vmem:[#allocation6 + $0x128] sm:$0xff]  ;;  %v3042_v56 = vld [vmem:[#allocation6 + $0x130] sm:$0xff] }
 0x1b0   :  { %3840 = vst [vmem:[#allocation44_spill] sm:$0xff] %v3042_v56  ;;  %1050 = vmatpush.msrb.mxu1 %v3040_v19  ;;  %1070 = vmatpush.msrb.mxu2 %v3042_v56 }
 0x1b1   :  { %3829 = vst [vmem:[#allocation33_spill] sm:$0xff] %v2962_v58  ;;  %820 = vmatmul.f32.vlgmr.msra.gmra.mxu0 %v2962_v58  ;;  %840 = vmatmul.f32.vlgmr.msra.gmra.mxu1 %v2962_v58 }
 0x1b2   :  { %860 = vmatmul.f32.vlgmr.msra.gmra.mxu2 %v2962_v58  ;;  %880 = vmatmul.f32.vlgmr.msra.gmra.mxu3 %v2962_v58  ;;  %v3060_v58 = vld [vmem:[#allocation6 + $0xe8] sm:$0xff] }
 0x1b3   :  { %1029 = vmatpush.msrb.mxu0 %v3028_v34  ;;  %1051 = vmatpush.msrb.mxu1 %v3050_v16 }
 0x1b4   :  { %1071 = vmatpush.msrb.mxu2 %v3052_v63  ;;  %1091 = vmatpush.msrb.mxu3 %v3054_v23 }
 0x1b5   :  { %1030 = vmatpush.msrb.mxu0 %v2924_v50  ;;  %1052 = vmatpush.msrb.mxu1 %v3060_v58 }
 0x1b6   :  { %1072 = vmatpush.msrb.mxu2 %v3062_v40  ;;  %1092 = vmatpush.msrb.mxu3 %v3064_v54 }
 0x1b7   :  { %1031 = vmatpush.msrb.mxu0 %v2927_v52  ;;  %1053 = vmatpush.msrb.mxu1 %v3072_v48 }
 0x1b8   :  { %1073 = vmatpush.msrb.mxu2 %v3074_v8  ;;  %1093 = vmatpush.msrb.mxu3 %v3076_v51 }
 0x1b9   :  { %1032 = vmatpush.msrb.mxu0 %v2930_v53  ;;  %1054 = vmatpush.msrb.mxu1 %v3083_v46 }
 0x1ba   :  { %1074 = vmatpush.msrb.mxu2 %v3085_v61  ;;  %1094 = vmatpush.msrb.mxu3 %v3087_v45 }
 0x1bb   :  { %1033 = vmatpush.msrb.mxu0 %v2934_v62 }
 0x1bd   :  { %1034 = vmatpush.msrb.mxu0 %v2938_v0 }
 0x1bf   :  { %1035 = vmatpush.msrb.mxu0 %v2941_v6 }
 0x1c1   :  { %1036 = vmatpush.msrb.mxu0 %v2943_v12  ;;  %v3126_v12 = vld [vmem:[#allocation6 + $0x38] sm:$0xff] }
 0x1c3   :  { %1037 = vmatpush.msrb.mxu0 %v2946_v15  ;;  %v3136_v15 = vld [vmem:[#allocation6 + $0x18] sm:$0xff] }
 0x1c5   :  { %1038 = vmatpush.msrb.mxu0 %v2950_v10 }
 0x1c7   :  { %1039 = vmatpush.msrb.mxu0 %v2953_v18 }
 0x1c9   :  { %1244 = vmatpush.msra.mxu0 %v2968_v4 }
 0x1cb   :  { %1245 = vmatpush.msra.mxu0 %v2980_v37 }
 0x1cd   :  { %1246 = vmatpush.msra.mxu0 %v2992_v7 }
 0x1cf   :  { %1247 = vmatpush.msra.mxu0 %v3004_v31 }
 0x1d1   :  { %1248 = vmatpush.msra.mxu0 %v3016_v24 }
 0x1d3   :  { %1249 = vmatpush.msra.mxu0 %v3028_v34 }
 0x1d5   :  { %1250 = vmatpush.msra.mxu0 %v2924_v50 }
 0x1d7   :  { %1251 = vmatpush.msra.mxu0 %v2927_v52 }
 0x1d9   :  { %1252 = vmatpush.msra.mxu0 %v2930_v53 }
 0x1db   :  { %1253 = vmatpush.msra.mxu0 %v2934_v62 }
 0x1dd   :  { %1254 = vmatpush.msra.mxu0 %v2938_v0 }
 0x1df   :  { %1255 = vmatpush.msra.mxu0 %v2941_v6  ;;  %v3852_v6 = vld [vmem:[#allocation32_spill] sm:$0xff] }
 0x22e   :  { %v821_v57 = vpop.f32.mrf.mxu0  ;;  %v841_v17 = vpop.f32.mrf.mxu1 }
 0x22f   :  { %v884_v9 = vadd.f32 %v821_v57, %v120_v35  ;;  %v885_v42 = vadd.f32 %v841_v17, %v2859_v27  ;;  %v3093_v17 = vld [vmem:[#allocation6 + $0x88] sm:$0xff]  ;;  %v3095_v27 = vld [vmem:[#allocation6 + $0x90] sm:$0xff]  ;;  %v3097_v57 = vld [vmem:[#allocation6 + $0x98] sm:$0xff] }
 0x230   :  { %3842 = vst [vmem:[#allocation46_spill] sm:$0xff] %v3097_v57  ;;  %1055 = vmatpush.msrb.mxu1 %v3093_v17  ;;  %v3105_v35 = vld [vmem:[#allocation6 + $0x78] sm:$0xff]  ;;  %1075 = vmatpush.msrb.mxu2 %v3095_v27 }
 0x231   :  { %v2183_v5 = vmul.f32 -1.442695, %v884_v9  ;;  %v2184_v33 = vmul.f32 -1.442695, %v885_v42  ;;  %v3101_v9 = vld [vmem:[#allocation6 + $0x68] sm:$0xff]  ;;  %v3103_v42 = vld [vmem:[#allocation6 + $0x70] sm:$0xff]  ;;  %1095 = vmatpush.msrb.mxu3 %v3097_v57 }
 0x232   :  { %3843 = vst [vmem:[#allocation47_spill] sm:$0xff] %v3101_v9  ;;  %1056 = vmatpush.msrb.mxu1 %v3101_v9  ;;  %1076 = vmatpush.msrb.mxu2 %v3103_v42  ;;  %v3124_v57 = vld [vmem:[#allocation6 + $0x30] sm:$0xff] }
 0x233   :  { %2242 = vpow2.f32 %v2183_v5  ;;  %3844 = vst [vmem:[#allocation48_spill] sm:$0xff] %v3103_v42  ;;  %v3113_v5 = vld [vmem:[#allocation6 + $0x50] sm:$0xff]  ;;  %1096 = vmatpush.msrb.mxu3 %v3105_v35 }
 0x234   :  { %3845 = vst [vmem:[#allocation49_spill] sm:$0xff] %v3105_v35  ;;  %2244 = vpow2.f32 %v2184_v33  ;;  %v3120_v33 = vld [vmem:[#allocation6 + $0x28] sm:$0xff]  ;;  %1057 = vmatpush.msrb.mxu1 %v3109_v55  ;;  %1077 = vmatpush.msrb.mxu2 %v3113_v5  ;;  %v3134_v35 = vld [vmem:[#allocation6 + $0x10] sm:$0xff] }
 0x235   :  { %v881_v36 = vpop.f32.mrf.mxu3  ;;  %1097 = vmatpush.msrb.mxu3 %v3115_v47 }
 0x236   :  { %v887_v1 = vadd.f32 %v881_v36, %v2876_v49  ;;  %v3130_v36 = vld [vmem:[#allocation6 + $0x8] sm:$0xff]  ;;  %1058 = vmatpush.msrb.mxu1 %v3120_v33  ;;  %1078 = vmatpush.msrb.mxu2 %v3124_v57 }
 0x237   :  { %1098 = vmatpush.msrb.mxu3 %v3126_v12  ;;  %v3847_v0 = vld [vmem:[#allocation46_spill] sm:$0xff] }
 0x238   :  { %v2185_v9 = vmul.f32 -1.442695, %v887_v1  ;;  %1059 = vmatpush.msrb.mxu1 %v3130_v36  ;;  %1079 = vmatpush.msrb.mxu2 %v3134_v35 }
 0x239   :  { %v2243_v49 = vpop.eup %2242  ;;  %1099 = vmatpush.msrb.mxu3 %v3136_v15 }
 0x23a   :  { %v2245_v55 = vpop.eup %2244  ;;  %v3138_v42 = vadd.f32 1.0, %v2243_v49  ;;  %2246 = vpow2.f32 %v2185_v9  ;;  %1264 = vmatpush.msra.mxu1 %v2970_v59  ;;  %1284 = vmatpush.msra.mxu2 %v2972_v14 }
 0x23b   :  { %v3142_v1 = vadd.f32 1.0, %v2245_v55  ;;  %1304 = vmatpush.msra.mxu3 %v2976_v30  ;;  %v861_v55 = vpop.f32.mrf.mxu2 }
 0x23c   :  { %2248 = vrcp.f32 %v3138_v42  ;;  %1265 = vmatpush.msra.mxu1 %v2982_v2  ;;  %1285 = vmatpush.msra.mxu2 %v2984_v20  ;;  %v886_v14 = vadd.f32 %v861_v55, %v2857_v25  ;;  %vm897_vm11 = vweird.f32 %v3138_v42 }
 0x23d   :  { %2250 = vrcp.f32 %v3142_v1  ;;  %1305 = vmatpush.msra.mxu3 %v2988_v3  ;;  %vm916_vm12 = vweird.f32 %v3142_v1 }
 0x23e   :  { %1266 = vmatpush.msra.mxu1 %v2994_v22  ;;  %1286 = vmatpush.msra.mxu2 %v2996_v11 }
 0x23f   :  { %1306 = vmatpush.msra.mxu3 %v3000_v29  ;;  %v903_v29 = vand.u32 2147483648, %v3138_v42 }
 0x240   :  { %v2247_v9 = vpop.eup %2246  ;;  %1267 = vmatpush.msra.mxu1 %v3006_v41  ;;  %1287 = vmatpush.msra.mxu2 %v3008_v43  ;;  %v922_v41 = vand.u32 2147483648, %v3142_v1  ;;  %v901_v43 = vand.u32 2147483647, %v3138_v42 }
 0x241   :  { %v3158_v49 = vadd.f32 1.0, %v2247_v9  ;;  %1307 = vmatpush.msra.mxu3 %v3012_v21 }
 0x242   :  { %v2249_v59 = vpop.eup %2248  ;;  %1268 = vmatpush.msra.mxu1 %v3018_v26  ;;  %1288 = vmatpush.msra.mxu2 %v3020_v28  ;;  %vm902_vm15 = vcmp.eq.f32.partialorder %v901_v43, 8.507059e+37  ;;  %v3849_v43 = vld [vmem:[#allocation47_spill] sm:$0xff] }
 0x243   :  { %v2251_v37 = vpop.eup %2250  ;;  %v893_v2 = vmul.f32 %v2249_v59, %v3138_v42  ;;  %2252 = vrcp.f32 %v3158_v49  ;;  %1308 = vmatpush.msra.mxu3 %v3024_v38  ;;  %vm898_vm9 = vweird.f32 %v2249_v59  ;;  %v942_v62 = vand.u32 2147483648, %v3158_v49 }
 0x244   :  { %v912_v9 = vmul.f32 %v2251_v37, %v3142_v1  ;;  %2254 = vtanh.f32 %v886_v14  ;;  %1269 = vmatpush.msra.mxu1 %v3030_v13  ;;  %vm917_vm10 = vweird.f32 %v2251_v37  ;;  %1289 = vmatpush.msra.mxu2 %v3032_v39  ;;  %vm899_vm13 = vmor %vm897_vm11, %vm898_vm9  ;;  %vm936_vm2 = vweird.f32 %v3158_v49 }
 0x245   :  { %v894_v25 = vsub.f32 1.0, %v893_v2  ;;  %1309 = vmatpush.msra.mxu3 %v3036_v44  ;;  %vm918_vm14 = vmor %vm916_vm12, %vm917_vm10 }
 0x246   :  { %v913_v55 = vsub.f32 1.0, %v912_v9  ;;  %v920_v9 = vand.u32 2147483647, %v3142_v1  ;;  %1270 = vmatpush.msra.mxu1 %v3040_v19  ;;  %1290 = vmatpush.msra.mxu2 %v3042_v56 }
 0x247   :  { %v895_v31 = vmul.f32 %v2249_v59, %v894_v25  ;;  %v904_v25 = vor.u32 1.1754944e-38, %v903_v29  ;;  %1310 = vmatpush.msra.mxu3 %v3044_v60 }
 0x248   :  { %v914_v2 = vmul.f32 %v2251_v37, %v913_v55  ;;  %1271 = vmatpush.msra.mxu1 %v3050_v16  ;;  %vm921_vm0 = vcmp.eq.f32.partialorder %v920_v9, 8.507059e+37  ;;  %1291 = vmatpush.msra.mxu2 %v3052_v63 }
 0x249   :  { %v3184_v14 = vpop.eup %2252  ;;  %v896_v38 = vadd.f32 %v2249_v59, %v895_v31  ;;  %v923_v31 = vor.u32 1.1754944e-38, %v922_v41  ;;  %1311 = vmatpush.msra.mxu3 %v3054_v23  ;;  %v3848_v41 = vld [vmem:[#allocation31_spill] sm:$0xff] }
 0x24a   :  { %v915_v55 = vadd.f32 %v2251_v37, %v914_v2  ;;  %v932_v39 = vmul.f32 %v3184_v14, %v3158_v49  ;;  %v2255_v50 = vpop.eup %2254  ;;  %1272 = vmatpush.msra.mxu1 %v3060_v58  ;;  %1292 = vmatpush.msra.mxu2 %v3062_v40  ;;  %vm937_vm1 = vweird.f32 %v3184_v14 }
 0x24b   :  { %v900_v42 = vsel %vm899_vm13, %v2249_v59, %v896_v38  ;;  %1312 = vmatpush.msra.mxu3 %v3064_v54  ;;  %vm938_vm3 = vmor %vm936_vm2, %vm937_vm1  ;;  %1256 = vmatpush.msra.mxu0 %v3848_v41  ;;  %v943_v38 = vor.u32 1.1754944e-38, %v942_v62 }
 0x24c   :  { %v905_v1 = vsel %vm902_vm15, %v904_v25, %v900_v42  ;;  %v919_v29 = vsel %vm918_vm14, %v2251_v37, %v915_v55  ;;  %v933_v2 = vsub.f32 1.0, %v932_v39  ;;  %1273 = vmatpush.msra.mxu1 %v3072_v48  ;;  %1293 = vmatpush.msra.mxu2 %v3074_v8  ;;  %v3850_v39 = vld [vmem:[#allocation48_spill] sm:$0xff]  ;;  %v3856_v55 = vld [vmem:[#allocation35_spill] sm:$0xff]  ;;  %v3858_v42 = vld [vmem:[#allocation37_spill] sm:$0xff] }
 0x24d   :  { %v924_v56 = vsel %vm921_vm0, %v923_v31, %v919_v29  ;;  %v947_v60 = vmul.f32 %v2255_v50, %v905_v1  ;;  %1313 = vmatpush.msra.mxu3 %v3076_v51  ;;  %1257 = vmatpush.msra.mxu0 %v3852_v6  ;;  %v3857_v31 = vld [vmem:[#allocation36_spill] sm:$0xff] }
 0x24e   :  { %v946_v59 = vmul.f32 %v924_v56, %v2959_v32  ;;  %v934_v52 = vmul.f32 %v3184_v14, %v933_v2  ;;  %1274 = vmatpush.msra.mxu1 %v3083_v46  ;;  %1294 = vmatpush.msra.mxu2 %v3085_v61  ;;  %v3851_v56 = vld [vmem:[#allocation49_spill] sm:$0xff]  ;;  %v3861_v50 = vld [vmem:[#allocation40_spill] sm:$0xff] }
 0x24f   :  { %1314 = vmatpush.msra.mxu3 %v3087_v45  ;;  %1258 = vmatpush.msra.mxu0 %v2950_v10  ;;  %v3855_v10 = vld [vmem:[#allocation34_spill] sm:$0xff] }
 0x250   :  { %v3208_v37 = vadd.f32 %v947_v60, %v946_v59  ;;  %v935_v53 = vadd.f32 %v3184_v14, %v934_v52  ;;  %v940_v60 = vand.u32 2147483647, %v3158_v49  ;;  %1275 = vmatpush.msra.mxu1 %v3093_v17  ;;  %1295 = vmatpush.msra.mxu2 %v3095_v27  ;;  %v3853_v49 = vld [vmem:[#allocation50_spill] sm:$0xff] }
 0x251   :  { %1315 = vmatpush.msra.mxu3 %v3847_v0  ;;  %1259 = vmatpush.msra.mxu0 %v2953_v18  ;;  %v3859_v18 = vld [vmem:[#allocation38_spill] sm:$0xff] }
 0x252   :  { %2256 = vtanh.f32 %v3208_v37  ;;  %v939_v32 = vsel %vm938_vm3, %v3184_v14, %v935_v53  ;;  %1276 = vmatpush.msra.mxu1 %v3849_v43  ;;  %1296 = vmatpush.msra.mxu2 %v3850_v39  ;;  %vm941_vm4 = vcmp.eq.f32.partialorder %v940_v60, 8.507059e+37 }
 0x253   :  { %1316 = vmatpush.msra.mxu3 %v3851_v56  ;;  %v944_v25 = vsel %vm941_vm4, %v943_v38, %v939_v32 }
 0x254   :  { %1277 = vmatpush.msra.mxu1 %v3853_v49  ;;  %1297 = vmatpush.msra.mxu2 %v3113_v5 }
 0x255   :  { %1317 = vmatpush.msra.mxu3 %v3115_v47 }
 0x256   :  { %1278 = vmatpush.msra.mxu1 %v3120_v33  ;;  %1298 = vmatpush.msra.mxu2 %v3124_v57 }
 0x257   :  { %1318 = vmatpush.msra.mxu3 %v3126_v12 }
 0x258   :  { %v2257_v9 = vpop.eup %2256  ;;  %1279 = vmatpush.msra.mxu1 %v3130_v36  ;;  %1299 = vmatpush.msra.mxu2 %v3134_v35 }
 0x259   :  { %v3235_v14 = vmul.f32 %v2257_v9, %v944_v25  ;;  %1319 = vmatpush.msra.mxu3 %v3136_v15 }
 0x25b   :  { %3854 = vst [vmem:[#allocation46_spill] sm:$0xff] %v3235_v14  ;;  %1040 = vmatmul.f32.vlgmr.msrb.gmra.mxu0 %v3235_v14  ;;  %1060 = vmatmul.f32.vlgmr.msrb.gmra.mxu1 %v3235_v14 }
 0x25c   :  { %1080 = vmatmul.f32.vlgmr.msrb.gmra.mxu2 %v3235_v14  ;;  %1100 = vmatmul.f32.vlgmr.msrb.gmra.mxu3 %v3235_v14 }
 0x25d   :  { %1464 = vmatpush.msrb.mxu0 %v2968_v4  ;;  %1484 = vmatpush.msrb.mxu1 %v3855_v10  ;;  %v3860_v4 = vld [vmem:[#allocation39_spill] sm:$0xff] }
 0x25e   :  { %1504 = vmatpush.msrb.mxu2 %v3856_v55  ;;  %1524 = vmatpush.msrb.mxu3 %v2976_v30  ;;  %v3862_v30 = vld [vmem:[#allocation41_spill] sm:$0xff] }
 0x25f   :  { %1465 = vmatpush.msrb.mxu0 %v3857_v31  ;;  %1485 = vmatpush.msrb.mxu1 %v3858_v42 }
 0x260   :  { %1505 = vmatpush.msrb.mxu2 %v2984_v20  ;;  %1525 = vmatpush.msrb.mxu3 %v2988_v3  ;;  %v3863_v20 = vld [vmem:[#allocation42_spill] sm:$0xff]  ;;  %v3864_v3 = vld [vmem:[#allocation43_spill] sm:$0xff] }
 0x261   :  { %1466 = vmatpush.msrb.mxu0 %v2992_v7  ;;  %1486 = vmatpush.msrb.mxu1 %v2994_v22  ;;  %v3865_v7 = vld [vmem:[#allocation44_spill] sm:$0xff]  ;;  %v3866_v22 = vld [vmem:[#allocation45_spill] sm:$0xff] }
 0x262   :  { %1506 = vmatpush.msrb.mxu2 %v2996_v11  ;;  %1526 = vmatpush.msrb.mxu3 %v3859_v18 }
 0x263   :  { %1467 = vmatpush.msrb.mxu0 %v3860_v4  ;;  %1487 = vmatpush.msrb.mxu1 %v3861_v50 }
 0x264   :  { %1507 = vmatpush.msrb.mxu2 %v3862_v30  ;;  %1527 = vmatpush.msrb.mxu3 %v3012_v21 }
 0x265   :  { %1468 = vmatpush.msrb.mxu0 %v3016_v24  ;;  %1488 = vmatpush.msrb.mxu1 %v3018_v26 }
 0x266   :  { %1508 = vmatpush.msrb.mxu2 %v3020_v28  ;;  %1528 = vmatpush.msrb.mxu3 %v3863_v20 }
 0x267   :  { %1469 = vmatpush.msrb.mxu0 %v3028_v34  ;;  %1489 = vmatpush.msrb.mxu1 %v3030_v13 }
 0x268   :  { %1509 = vmatpush.msrb.mxu2 %v3864_v3  ;;  %1529 = vmatpush.msrb.mxu3 %v3036_v44  ;;  %v3321_v3 = vld [vmem:[#allocation6 + $0x100] sm:$0xff] }
 0x269   :  { %1490 = vmatpush.msrb.mxu1 %v3040_v19  ;;  %v3871_v19 = vld [vmem:[#allocation13_spill] sm:$0xff] }
 0x26a   :  { %1510 = vmatpush.msrb.mxu2 %v3865_v7  ;;  %1530 = vmatpush.msrb.mxu3 %v3866_v22  ;;  %v3324_v7 = vld [vmem:[#allocation6 + $0xe0] sm:$0xff] }
 0x26b   :  { %1491 = vmatpush.msrb.mxu1 %v3050_v16  ;;  %v3873_v22 = vld [vmem:[#allocation9_spill] sm:$0xff] }
 0x26c   :  { %1511 = vmatpush.msrb.mxu2 %v3052_v63  ;;  %1531 = vmatpush.msrb.mxu3 %v3054_v23  ;;  %v3867_v23 = vld [vmem:[#allocation25_spill] sm:$0xff]  ;;  %v3869_v63 = vld [vmem:[#allocation14_spill] sm:$0xff] }
 0x26d   :  { %1492 = vmatpush.msrb.mxu1 %v3060_v58 }
 0x26e   :  { %1512 = vmatpush.msrb.mxu2 %v3062_v40  ;;  %1532 = vmatpush.msrb.mxu3 %v3064_v54 }
 0x26f   :  { %1493 = vmatpush.msrb.mxu1 %v3072_v48 }
 0x270   :  { %1513 = vmatpush.msrb.mxu2 %v3074_v8  ;;  %1533 = vmatpush.msrb.mxu3 %v3076_v51 }
 0x271   :  { %1494 = vmatpush.msrb.mxu1 %v3083_v46 }
 0x272   :  { %1514 = vmatpush.msrb.mxu2 %v3085_v61  ;;  %1534 = vmatpush.msrb.mxu3 %v3087_v45  ;;  %v3868_v45 = vld [vmem:[#allocation30_spill] sm:$0xff] }
 0x273   :  { %1495 = vmatpush.msrb.mxu1 %v3093_v17  ;;  %v123_v48 = vadd.f32 %v3868_v45, %v3867_v23  ;;  %v126_v45 = vadd.f32 %v3873_v22, %v3867_v23 }
 0x274   :  { %1515 = vmatpush.msrb.mxu2 %v3095_v27  ;;  %1535 = vmatpush.msrb.mxu3 %v3847_v0 }
 0x275   :  { %1496 = vmatpush.msrb.mxu1 %v3849_v43 }
 0x276   :  { %1516 = vmatpush.msrb.mxu2 %v3850_v39  ;;  %1536 = vmatpush.msrb.mxu3 %v3851_v56 }
 0x277   :  { %1497 = vmatpush.msrb.mxu1 %v3853_v49 }
 0x278   :  { %1517 = vmatpush.msrb.mxu2 %v3113_v5  ;;  %1537 = vmatpush.msrb.mxu3 %v3115_v47 }
 0x279   :  { %1498 = vmatpush.msrb.mxu1 %v3120_v33 }
 0x27a   :  { %1518 = vmatpush.msrb.mxu2 %v3124_v57  ;;  %1538 = vmatpush.msrb.mxu3 %v3126_v12  ;;  %v3870_v12 = vld [vmem:[#allocation20_spill] sm:$0xff] }
 0x27b   :  { %1499 = vmatpush.msrb.mxu1 %v3130_v36 }
 0x27c   :  { %1519 = vmatpush.msrb.mxu2 %v3134_v35  ;;  %1539 = vmatpush.msrb.mxu3 %v3136_v15 }
 0x2d8   :  { %v1041_v51 = vpop.f32.mrf.mxu0  ;;  %v1061_v54 = vpop.f32.mrf.mxu1 }
 0x2d9   :  { %v1104_v61 = vadd.f32 %v1041_v51, %v123_v48  ;;  %v1105_v8 = vadd.f32 %v1061_v54, %v3869_v63  ;;  %v3329_v54 = vld [vmem:[#allocation6 + $0xc0] sm:$0xff]  ;;  %v3874_v63 = vld [vmem:[#allocation16_spill] sm:$0xff] }
 0x2db   :  { %v2186_v16 = vmul.f32 -1.442695, %v1104_v61  ;;  %v2187_v40 = vmul.f32 -1.442695, %v1105_v8 }
 0x2dd   :  { %2258 = vpow2.f32 %v2186_v16  ;;  %v3333_v16 = vld [vmem:[#allocation6 + $0xa0] sm:$0xff] }
 0x2de   :  { %2260 = vpow2.f32 %v2187_v40 }
 0x2df   :  { %v1101_v47 = vpop.f32.mrf.mxu3  ;;  %v1081_v28 = vpop.f32.mrf.mxu2 }
 0x2e0   :  { %v1107_v58 = vadd.f32 %v1101_v47, %v3870_v12  ;;  %v1106_v46 = vadd.f32 %v1081_v28, %v3871_v19  ;;  %v3336_v12 = vld [vmem:[#allocation6 + $0x80] sm:$0xff] }
 0x2e2   :  { %v2188_v11 = vmul.f32 -1.442695, %v1107_v58  ;;  %v3338_v58 = vld [vmem:[#allocation6 + $0x60] sm:$0xff] }
 0x2e3   :  { %v2259_v21 = vpop.eup %2258  ;;  %3875 = vst [vmem:[#allocation47_spill] sm:$0xff] %v3338_v58 }
 0x2e4   :  { %v2261_v24 = vpop.eup %2260  ;;  %v1111_v26 = vadd.f32 1.0, %v2259_v21  ;;  %2262 = vpow2.f32 %v2188_v11  ;;  %v3341_v11 = vld [vmem:[#allocation6 + $0x40] sm:$0xff] }
 0x2e5   :  { %v1130_v15 = vadd.f32 1.0, %v2261_v24  ;;  %3876 = vst [vmem:[#allocation48_spill] sm:$0xff] %v3341_v11  ;;  %v3877_v24 = vld [vmem:[#allocation23_spill] sm:$0xff] }
 0x2e6   :  { %2264 = vrcp.f32 %v1111_v26  ;;  %v1123_v33 = vand.u32 2147483648, %v1111_v26  ;;  %v1121_v29 = vand.u32 2147483647, %v1111_v26  ;;  %vm1117_vm7 = vweird.f32 %v1111_v26 }
 0x2e7   :  { %2266 = vrcp.f32 %v1130_v15  ;;  %v1142_v36 = vand.u32 2147483648, %v1130_v15  ;;  %v1140_v59 = vand.u32 2147483647, %v1130_v15  ;;  %vm1136_vm8 = vweird.f32 %v1130_v15 }
 0x2e8   :  { %v1124_v62 = vor.u32 1.1754944e-38, %v1123_v33  ;;  %vm1122_vm11 = vcmp.eq.f32.partialorder %v1121_v29, 8.507059e+37 }
 0x2e9   :  { %v1143_v32 = vor.u32 1.1754944e-38, %v1142_v36  ;;  %vm1141_vm12 = vcmp.eq.f32.partialorder %v1140_v59, 8.507059e+37 }
 0x2ea   :  { %v2263_v34 = vpop.eup %2262 }
 0x2eb   :  { %v1150_v13 = vadd.f32 1.0, %v2263_v34  ;;  %v3348_v34 = vld [vmem:[#allocation6] sm:$0xff] }
 0x2ec   :  { %v2265_v44 = vpop.eup %2264 }
 0x2ed   :  { %v2267_v17 = vpop.eup %2266  ;;  %v1113_v27 = vmul.f32 %v2265_v44, %v1111_v26  ;;  %2268 = vrcp.f32 %v1150_v13  ;;  %vm1118_vm5 = vweird.f32 %v2265_v44  ;;  %v1162_v31 = vand.u32 2147483648, %v1150_v13 }
 0x2ee   :  { %v1132_v57 = vmul.f32 %v2267_v17, %v1130_v15  ;;  %2270 = vtanh.f32 %v1106_v46  ;;  %vm1137_vm6 = vweird.f32 %v2267_v17  ;;  %vm1119_vm9 = vmor %vm1117_vm7, %vm1118_vm5  ;;  %vm1156_vm14 = vweird.f32 %v1150_v13  ;;  %v3345_v15 = vld [vmem:[#allocation6 + $0x20] sm:$0xff] }
 0x2ef   :  { %v1114_v35 = vsub.f32 1.0, %v1113_v27  ;;  %vm1138_vm10 = vmor %vm1136_vm8, %vm1137_vm6  ;;  %v1160_v42 = vand.u32 2147483647, %v1150_v13  ;;  %v1163_v4 = vor.u32 1.1754944e-38, %v1162_v31 }
 0x2f0   :  { %v1133_v5 = vsub.f32 1.0, %v1132_v57 }
 0x2f1   :  { %v1115_v1 = vmul.f32 %v2265_v44, %v1114_v35  ;;  %vm1161_vm0 = vcmp.eq.f32.partialorder %v1160_v42, 8.507059e+37 }
 0x2f2   :  { %v1134_v2 = vmul.f32 %v2267_v17, %v1133_v5  ;;  %v3878_v5 = vld [vmem:[#allocation15_spill] sm:$0xff] }
 0x2f3   :  { %v2269_v52 = vpop.eup %2268  ;;  %v1116_v53 = vadd.f32 %v2265_v44, %v1115_v1 }
 0x2f4   :  { %v1135_v60 = vadd.f32 %v2267_v17, %v1134_v2  ;;  %v1152_v0 = vmul.f32 %v2269_v52, %v1150_v13  ;;  %v2271_v43 = vpop.eup %2270  ;;  %vm1157_vm13 = vweird.f32 %v2269_v52 }
 0x2f5   :  { %v1120_v41 = vsel %vm1119_vm9, %v2265_v44, %v1116_v53  ;;  %vm1158_vm15 = vmor %vm1156_vm14, %vm1157_vm13 }
 0x2f6   :  { %v1125_v38 = vsel %vm1122_vm11, %v1124_v62, %v1120_v41  ;;  %v1139_v39 = vsel %vm1138_vm10, %v2267_v17, %v1135_v60  ;;  %v1153_v56 = vsub.f32 1.0, %v1152_v0 }
 0x2f7   :  { %v1144_v6 = vsel %vm1141_vm12, %v1143_v32, %v1139_v39  ;;  %v1167_v49 = vmul.f32 %v2271_v43, %v1125_v38 }
 0x2f8   :  { %v1166_v9 = vmul.f32 %v1144_v6, %v3208_v37  ;;  %v1154_v25 = vmul.f32 %v2269_v52, %v1153_v56  ;;  %v3318_v37 = vld [vmem:[#allocation6 + $0x120] sm:$0xff] }
 0x2f9   :  { %1470 = vmatpush.msrb.mxu0 %v3318_v37 }
 0x2fa   :  { %v3309_v10 = vadd.f32 %v1167_v49, %v1166_v9  ;;  %v1155_v55 = vadd.f32 %v2269_v52, %v1154_v25 }
 0x2fb   :  { %1471 = vmatpush.msrb.mxu0 %v3321_v3 }
 0x2fc   :  { %2272 = vtanh.f32 %v3309_v10  ;;  %v1159_v18 = vsel %vm1158_vm15, %v2269_v52, %v1155_v55 }
 0x2fd   :  { %v1164_v30 = vsel %vm1161_vm0, %v1163_v4, %v1159_v18  ;;  %1472 = vmatpush.msrb.mxu0 %v3324_v7 }
 0x2ff   :  { %1473 = vmatpush.msrb.mxu0 %v3329_v54 }
 0x301   :  { %1474 = vmatpush.msrb.mxu0 %v3333_v16 }
 0x302   :  { %v2273_v50 = vpop.eup %2272 }
 0x303   :  { %v3312_v20 = vmul.f32 %v2273_v50, %v1164_v30  ;;  %1475 = vmatpush.msrb.mxu0 %v3336_v12 }
 0x305   :  { %3872 = vst [vmem:[#allocation31_spill] sm:$0xff] %v3312_v20  ;;  %1260 = vmatmul.f32.vlgmr.msra.gmra.mxu0 %v3312_v20  ;;  %1280 = vmatmul.f32.vlgmr.msra.gmra.mxu1 %v3312_v20 }
 0x306   :  { %1300 = vmatmul.f32.vlgmr.msra.gmra.mxu2 %v3312_v20  ;;  %1320 = vmatmul.f32.vlgmr.msra.gmra.mxu3 %v3312_v20  ;;  %v3886_v20 = vld [vmem:[#allocation26_spill] sm:$0xff] }
 0x307   :  { %1476 = vmatpush.msrb.mxu0 %v3338_v58 }
 0x309   :  { %1477 = vmatpush.msrb.mxu0 %v3341_v11 }
 0x30b   :  { %1478 = vmatpush.msrb.mxu0 %v3345_v15 }
 0x30d   :  { %1479 = vmatpush.msrb.mxu0 %v3348_v34 }
 0x382   :  { %v1261_v48 = vpop.f32.mrf.mxu0  ;;  %v1281_v51 = vpop.f32.mrf.mxu1 }
 0x383   :  { %v1324_v61 = vadd.f32 %v1261_v48, %v126_v45  ;;  %v1325_v8 = vadd.f32 %v1281_v51, %v3874_v63 }
 0x385   :  { %v2189_v40 = vmul.f32 -1.442695, %v1324_v61  ;;  %v2190_v47 = vmul.f32 -1.442695, %v1325_v8 }
 0x387   :  { %2274 = vpow2.f32 %v2189_v40 }
 0x388   :  { %2276 = vpow2.f32 %v2190_v47  ;;  %v3365_v47 = vld [vmem:[#allocation6 + $0x1e8] sm:$0xff] }
 0x389   :  { %v1321_v21 = vpop.f32.mrf.mxu3  ;;  %v1301_v17 = vpop.f32.mrf.mxu2  ;;  %1704 = vmatpush.msra.mxu1 %v3365_v47 }
 0x38a   :  { %v1327_v26 = vadd.f32 %v1321_v21, %v3877_v24  ;;  %v1326_v33 = vadd.f32 %v1301_v17, %v3878_v5  ;;  %v3367_v21 = vld [vmem:[#allocation6 + $0x1f0] sm:$0xff]  ;;  %v3371_v24 = vld [vmem:[#allocation6 + $0x1f8] sm:$0xff] }
 0x38b   :  { %1724 = vmatpush.msra.mxu2 %v3367_v21  ;;  %1744 = vmatpush.msra.mxu3 %v3371_v24  ;;  %v3391_v17 = vld [vmem:[#allocation6 + $0x1b0] sm:$0xff] }
 0x38c   :  { %v2191_v28 = vmul.f32 -1.442695, %v1327_v26  ;;  %v3375_v26 = vld [vmem:[#allocation6 + $0x1c0] sm:$0xff]  ;;  %v3403_v5 = vld [vmem:[#allocation6 + $0x190] sm:$0xff] }
 0x38d   :  { %v2275_v13 = vpop.eup %2274 }
 0x38e   :  { %v2277_v44 = vpop.eup %2276  ;;  %v1331_v19 = vadd.f32 1.0, %v2275_v13  ;;  %2278 = vpow2.f32 %v2191_v28  ;;  %v3377_v28 = vld [vmem:[#allocation6 + $0x1c8] sm:$0xff]  ;;  %v3379_v13 = vld [vmem:[#allocation6 + $0x1d0] sm:$0xff] }
 0x38f   :  { %v1350_v46 = vadd.f32 1.0, %v2277_v44  ;;  %1705 = vmatpush.msra.mxu1 %v3377_v28  ;;  %v3383_v44 = vld [vmem:[#allocation6 + $0x1d8] sm:$0xff]  ;;  %1725 = vmatpush.msra.mxu2 %v3379_v13 }
 0x390   :  { %2280 = vrcp.f32 %v1331_v19  ;;  %v1343_v52 = vand.u32 2147483648, %v1331_v19  ;;  %v1341_v60 = vand.u32 2147483647, %v1331_v19  ;;  %vm1337_vm3 = vweird.f32 %v1331_v19  ;;  %1745 = vmatpush.msra.mxu3 %v3383_v44 }
 0x391   :  { %2282 = vrcp.f32 %v1350_v46  ;;  %v1362_v53 = vand.u32 2147483648, %v1350_v46  ;;  %v1360_v32 = vand.u32 2147483647, %v1350_v46  ;;  %vm1356_vm4 = vweird.f32 %v1350_v46  ;;  %1726 = vmatpush.msra.mxu2 %v3391_v17 }
 0x392   :  { %v1344_v38 = vor.u32 1.1754944e-38, %v1343_v52  ;;  %vm1342_vm7 = vcmp.eq.f32.partialorder %v1341_v60, 8.507059e+37  ;;  %v3425_v52 = vld [vmem:[#allocation6 + $0x148] sm:$0xff] }
 0x393   :  { %v1363_v6 = vor.u32 1.1754944e-38, %v1362_v53  ;;  %vm1361_vm8 = vcmp.eq.f32.partialorder %v1360_v32, 8.507059e+37  ;;  %1727 = vmatpush.msra.mxu2 %v3403_v5  ;;  %v3427_v53 = vld [vmem:[#allocation6 + $0x150] sm:$0xff]  ;;  %v3435_v60 = vld [vmem:[#allocation6 + $0x128] sm:$0xff]  ;;  %v3439_v32 = vld [vmem:[#allocation6 + $0x138] sm:$0xff] }
 0x394   :  { %v2279_v27 = vpop.eup %2278 }
 0x395   :  { %v1370_v57 = vadd.f32 1.0, %v2279_v27  ;;  %v3395_v27 = vld [vmem:[#allocation6 + $0x1b8] sm:$0xff] }
 0x396   :  { %v2281_v35 = vpop.eup %2280  ;;  %1746 = vmatpush.msra.mxu3 %v3395_v27 }
 0x397   :  { %v2283_v36 = vpop.eup %2282  ;;  %v1333_v1 = vmul.f32 %v2281_v35, %v1331_v19  ;;  %2284 = vrcp.f32 %v1370_v57  ;;  %vm1338_vm1 = vweird.f32 %v2281_v35  ;;  %v1382_v45 = vand.u32 2147483648, %v1370_v57  ;;  %v3387_v19 = vld [vmem:[#allocation6 + $0x1a0] sm:$0xff] }
 0x398   :  { %v1352_v29 = vmul.f32 %v2283_v36, %v1350_v46  ;;  %2286 = vtanh.f32 %v1326_v33  ;;  %vm1357_vm2 = vweird.f32 %v2283_v36  ;;  %vm1339_vm5 = vmor %vm1337_vm3, %vm1338_vm1  ;;  %vm1376_vm10 = vweird.f32 %v1370_v57  ;;  %v3389_v46 = vld [vmem:[#allocation6 + $0x1a8] sm:$0xff]  ;;  %v3407_v33 = vld [vmem:[#allocation6 + $0x198] sm:$0xff] }
 0x399   :  { %v1334_v2 = vsub.f32 1.0, %v1333_v1  ;;  %vm1358_vm6 = vmor %vm1356_vm4, %vm1357_vm2  ;;  %v1380_v48 = vand.u32 2147483647, %v1370_v57  ;;  %v1383_v61 = vor.u32 1.1754944e-38, %v1382_v45  ;;  %1706 = vmatpush.msra.mxu1 %v3389_v46  ;;  %1747 = vmatpush.msra.mxu3 %v3407_v33  ;;  %v3413_v1 = vld [vmem:[#allocation6 + $0x168] sm:$0xff] }
 0x39a   :  { %v1353_v59 = vsub.f32 1.0, %v1352_v29  ;;  %v3415_v29 = vld [vmem:[#allocation6 + $0x170] sm:$0xff]  ;;  %v3478_v45 = vld [vmem:[#allocation6 + $0xa8] sm:$0xff] }
 0x39b   :  { %v1335_v62 = vmul.f32 %v2281_v35, %v1334_v2  ;;  %vm1381_vm12 = vcmp.eq.f32.partialorder %v1380_v48, 8.507059e+37  ;;  %v3419_v2 = vld [vmem:[#allocation6 + $0x178] sm:$0xff]  ;;  %1728 = vmatpush.msra.mxu2 %v3415_v29  ;;  %v3480_v48 = vld [vmem:[#allocation6 + $0xb0] sm:$0xff] }
 0x39c   :  { %v1354_v0 = vmul.f32 %v2283_v36, %v1353_v59  ;;  %1748 = vmatpush.msra.mxu3 %v3419_v2  ;;  %v3423_v59 = vld [vmem:[#allocation6 + $0x140] sm:$0xff] }
 0x39d   :  { %v2285_v41 = vpop.eup %2284  ;;  %v1336_v43 = vadd.f32 %v2281_v35, %v1335_v62  ;;  %v3431_v62 = vld [vmem:[#allocation6 + $0x158] sm:$0xff]  ;;  %1729 = vmatpush.msra.mxu2 %v3427_v53 }
 0x39e   :  { %v1355_v39 = vadd.f32 %v2283_v36, %v1354_v0  ;;  %v1372_v56 = vmul.f32 %v2285_v41, %v1370_v57  ;;  %v2287_v9 = vpop.eup %2286  ;;  %vm1377_vm9 = vweird.f32 %v2285_v41  ;;  %v3399_v57 = vld [vmem:[#allocation6 + $0x180] sm:$0xff]  ;;  %1749 = vmatpush.msra.mxu3 %v3431_v62  ;;  %v3437_v0 = vld [vmem:[#allocation6 + $0x130] sm:$0xff] }
 0x39f   :  { %v1340_v49 = vsel %vm1339_vm5, %v2281_v35, %v1336_v43  ;;  %vm1378_vm11 = vmor %vm1376_vm10, %vm1377_vm9  ;;  %v3401_v35 = vld [vmem:[#allocation6 + $0x188] sm:$0xff]  ;;  %1730 = vmatpush.msra.mxu2 %v3437_v0  ;;  %v3447_v43 = vld [vmem:[#allocation6 + $0x110] sm:$0xff] }
 0x3a0   :  { %v1345_v25 = vsel %vm1342_vm7, %v1344_v38, %v1340_v49  ;;  %v1359_v55 = vsel %vm1358_vm6, %v2283_v36, %v1355_v39  ;;  %v1373_v31 = vsub.f32 1.0, %v1372_v56  ;;  %1707 = vmatpush.msra.mxu1 %v3401_v35  ;;  %v3411_v36 = vld [vmem:[#allocation6 + $0x160] sm:$0xff]  ;;  %1750 = vmatpush.msra.mxu3 %v3439_v32  ;;  %v3449_v38 = vld [vmem:[#allocation6 + $0x118] sm:$0xff]  ;;  %v3455_v39 = vld [vmem:[#allocation6 + $0xe8] sm:$0xff] }
 0x3a1   :  { %v1364_v42 = vsel %vm1361_vm8, %v1363_v6, %v1359_v55  ;;  %v1387_v18 = vmul.f32 %v2287_v9, %v1345_v25  ;;  %1731 = vmatpush.msra.mxu2 %v3447_v43  ;;  %v3457_v56 = vld [vmem:[#allocation6 + $0xf0] sm:$0xff]  ;;  %v3459_v6 = vld [vmem:[#allocation6 + $0xf8] sm:$0xff]  ;;  %v3880_v49 = vld [vmem:[#allocation10_spill] sm:$0xff] }
 0x3a2   :  { %v1386_v4 = vmul.f32 %v1364_v42, %v3309_v10  ;;  %v1374_v50 = vmul.f32 %v2285_v41, %v1373_v31  ;;  %v3363_v10 = vld [vmem:[#allocation6 + $0x1e0] sm:$0xff]  ;;  %1708 = vmatpush.msra.mxu1 %v3413_v1  ;;  %1751 = vmatpush.msra.mxu3 %v3449_v38  ;;  %v129_v9 = vadd.f32 %v3880_v49, %v3867_v23  ;;  %v3467_v31 = vld [vmem:[#allocation6 + $0xc8] sm:$0xff]  ;;  %v3469_v42 = vld [vmem:[#allocation6 + $0xd0] sm:$0xff] }
 0x3a3   :  { %1684 = vmatpush.msra.mxu0 %v3363_v10  ;;  %1732 = vmatpush.msra.mxu2 %v3457_v56  ;;  %v3490_v49 = vld [vmem:[#allocation6 + $0x90] sm:$0xff] }
 0x3a4   :  { %v3354_v30 = vadd.f32 %v1387_v18, %v1386_v4  ;;  %v1375_v22 = vadd.f32 %v2285_v41, %v1374_v50  ;;  %1709 = vmatpush.msra.mxu1 %v3425_v52  ;;  %1752 = vmatpush.msra.mxu3 %v3459_v6  ;;  %v3471_v18 = vld [vmem:[#allocation6 + $0xd8] sm:$0xff]  ;;  %v3881_v50 = vld [vmem:[#allocation18_spill] sm:$0xff]  ;;  %v3519_v23 = vld [vmem:[#allocation6 + $0x30] sm:$0xff] }
 0x3a5   :  { %1685 = vmatpush.msra.mxu0 %v3375_v26  ;;  %1733 = vmatpush.msra.mxu2 %v3469_v42 }
 0x3a6   :  { %2288 = vtanh.f32 %v3354_v30  ;;  %v1379_v51 = vsel %vm1378_vm11, %v2285_v41, %v1375_v22  ;;  %1710 = vmatpush.msra.mxu1 %v3435_v60  ;;  %v3445_v41 = vld [vmem:[#allocation6 + $0x108] sm:$0xff]  ;;  %1753 = vmatpush.msra.mxu3 %v3471_v18 }
 0x3a7   :  { %v1384_v8 = vsel %vm1381_vm12, %v1383_v61, %v1379_v51  ;;  %1686 = vmatpush.msra.mxu0 %v3387_v19  ;;  %v3482_v51 = vld [vmem:[#allocation6 + $0xb8] sm:$0xff]  ;;  %1734 = vmatpush.msra.mxu2 %v3480_v48 }
 0x3a8   :  { %1711 = vmatpush.msra.mxu1 %v3445_v41  ;;  %1754 = vmatpush.msra.mxu3 %v3482_v51 }
 0x3a9   :  { %1687 = vmatpush.msra.mxu0 %v3399_v57  ;;  %1735 = vmatpush.msra.mxu2 %v3490_v49 }
 0x3aa   :  { %1712 = vmatpush.msra.mxu1 %v3455_v39 }
 0x3ab   :  { %1688 = vmatpush.msra.mxu0 %v3411_v36 }
 0x3ac   :  { %v2289_v63 = vpop.eup %2288  ;;  %1713 = vmatpush.msra.mxu1 %v3467_v31 }
 0x3ad   :  { %v3357_v40 = vmul.f32 %v2289_v63, %v1384_v8  ;;  %1689 = vmatpush.msra.mxu0 %v3423_v59  ;;  %v3488_v8 = vld [vmem:[#allocation6 + $0x88] sm:$0xff] }
 0x3ae   :  { %1714 = vmatpush.msra.mxu1 %v3478_v45 }
 0x3af   :  { %3879 = vst [vmem:[#allocation49_spill] sm:$0xff] %v3357_v40  ;;  %1480 = vmatmul.f32.vlgmr.msrb.gmra.mxu0 %v3357_v40  ;;  %1500 = vmatmul.f32.vlgmr.msrb.gmra.mxu1 %v3357_v40 }
 0x3b0   :  { %1520 = vmatmul.f32.vlgmr.msrb.gmra.mxu2 %v3357_v40  ;;  %1540 = vmatmul.f32.vlgmr.msrb.gmra.mxu3 %v3357_v40  ;;  %v3510_v40 = vld [vmem:[#allocation6 + $0x58] sm:$0xff] }
 0x3b1   :  { %1690 = vmatpush.msra.mxu0 %v3318_v37  ;;  %1715 = vmatpush.msra.mxu1 %v3488_v8 }
 0x3b3   :  { %1691 = vmatpush.msra.mxu0 %v3321_v3 }
 0x3b5   :  { %1692 = vmatpush.msra.mxu0 %v3324_v7 }
 0x3b7   :  { %1693 = vmatpush.msra.mxu0 %v3329_v54 }
 0x3b9   :  { %1694 = vmatpush.msra.mxu0 %v3333_v16 }
 0x3bb   :  { %1695 = vmatpush.msra.mxu0 %v3336_v12 }
 0x3bd   :  { %1696 = vmatpush.msra.mxu0 %v3338_v58  ;;  %v3521_v58 = vld [vmem:[#allocation6 + $0x38] sm:$0xff] }
 0x3bf   :  { %1697 = vmatpush.msra.mxu0 %v3341_v11  ;;  %v3531_v11 = vld [vmem:[#allocation6 + $0x18] sm:$0xff] }
 0x3c1   :  { %1698 = vmatpush.msra.mxu0 %v3345_v15 }
 0x3c3   :  { %1699 = vmatpush.msra.mxu0 %v3348_v34 }
 0x3c5   :  { %1904 = vmatpush.msrb.mxu0 %v3363_v10 }
 0x3c7   :  { %1905 = vmatpush.msrb.mxu0 %v3375_v26 }
 0x3c9   :  { %1906 = vmatpush.msrb.mxu0 %v3387_v19 }
 0x3cb   :  { %1907 = vmatpush.msrb.mxu0 %v3399_v57 }
 0x3cd   :  { %1908 = vmatpush.msrb.mxu0 %v3411_v36 }
 0x3cf   :  { %1909 = vmatpush.msrb.mxu0 %v3423_v59 }
 0x3d1   :  { %1910 = vmatpush.msrb.mxu0 %v3318_v37 }
 0x3d3   :  { %1911 = vmatpush.msrb.mxu0 %v3321_v3 }
 0x3d5   :  { %1912 = vmatpush.msrb.mxu0 %v3324_v7 }
 0x3d7   :  { %1913 = vmatpush.msrb.mxu0 %v3329_v54 }
 0x3d9   :  { %1914 = vmatpush.msrb.mxu0 %v3333_v16 }
 0x3db   :  { %1915 = vmatpush.msrb.mxu0 %v3336_v12  ;;  %v3892_v12 = vld [vmem:[#allocation48_spill] sm:$0xff] }
 0x42c   :  { %v1481_v25 = vpop.f32.mrf.mxu0  ;;  %v1501_v55 = vpop.f32.mrf.mxu1 }
 0x42d   :  { %v1544_v4 = vadd.f32 %v1481_v25, %v129_v9  ;;  %v1545_v22 = vadd.f32 %v1501_v55, %v3881_v50  ;;  %v3492_v9 = vld [vmem:[#allocation6 + $0x98] sm:$0xff]  ;;  %v3496_v25 = vld [vmem:[#allocation6 + $0x68] sm:$0xff]  ;;  %v3498_v55 = vld [vmem:[#allocation6 + $0x70] sm:$0xff] }
 0x42e   :  { %3882 = vst [vmem:[#allocation32_spill] sm:$0xff] %v3496_v25  ;;  %1755 = vmatpush.msra.mxu3 %v3492_v9  ;;  %v3504_v50 = vld [vmem:[#allocation6 + $0x48] sm:$0xff]  ;;  %1716 = vmatpush.msra.mxu1 %v3496_v25 }
 0x42f   :  { %v2192_v61 = vmul.f32 -1.442695, %v1544_v4  ;;  %v2193_v63 = vmul.f32 -1.442695, %v1545_v22  ;;  %3883 = vst [vmem:[#allocation50_spill] sm:$0xff] %v3498_v55  ;;  %v3500_v4 = vld [vmem:[#allocation6 + $0x78] sm:$0xff]  ;;  %1736 = vmatpush.msra.mxu2 %v3498_v55 }
 0x430   :  { %3884 = vst [vmem:[#allocation34_spill] sm:$0xff] %v3500_v4  ;;  %1756 = vmatpush.msra.mxu3 %v3500_v4  ;;  %1717 = vmatpush.msra.mxu1 %v3504_v50  ;;  %v3529_v4 = vld [vmem:[#allocation6 + $0x10] sm:$0xff] }
 0x431   :  { %2290 = vpow2.f32 %v2192_v61  ;;  %3885 = vst [vmem:[#allocation35_spill] sm:$0xff] %v3504_v50  ;;  %v3508_v61 = vld [vmem:[#allocation6 + $0x50] sm:$0xff] }
 0x432   :  { %2292 = vpow2.f32 %v2193_v63  ;;  %v3515_v63 = vld [vmem:[#allocation6 + $0x28] sm:$0xff]  ;;  %1737 = vmatpush.msra.mxu2 %v3508_v61  ;;  %1757 = vmatpush.msra.mxu3 %v3510_v40 }
 0x433   :  { %v1541_v22 = vpop.f32.mrf.mxu3  ;;  %1718 = vmatpush.msra.mxu1 %v3515_v63 }
 0x434   :  { %v1547_v14 = vadd.f32 %v1541_v22, %v3886_v20  ;;  %v3525_v20 = vld [vmem:[#allocation6 + $0x8] sm:$0xff]  ;;  %1738 = vmatpush.msra.mxu2 %v3519_v23  ;;  %1758 = vmatpush.msra.mxu3 %v3521_v58 }
 0x435   :  { %1719 = vmatpush.msra.mxu1 %v3525_v20 }
 0x436   :  { %v2194_v25 = vmul.f32 -1.442695, %v1547_v14  ;;  %1739 = vmatpush.msra.mxu2 %v3529_v4  ;;  %1759 = vmatpush.msra.mxu3 %v3531_v11 }
 0x437   :  { %v2291_v22 = vpop.eup %2290  ;;  %1924 = vmatpush.msrb.mxu1 %v3365_v47  ;;  %v3887_v47 = vld [vmem:[#allocation17_spill] sm:$0xff] }
 0x438   :  { %v2293_v50 = vpop.eup %2292  ;;  %v3533_v55 = vadd.f32 1.0, %v2291_v22  ;;  %2294 = vpow2.f32 %v2194_v25  ;;  %1944 = vmatpush.msrb.mxu2 %v3367_v21  ;;  %1964 = vmatpush.msrb.mxu3 %v3371_v24  ;;  %v1521_v25 = vpop.f32.mrf.mxu2 }
 0x439   :  { %v3537_v14 = vadd.f32 1.0, %v2293_v50  ;;  %1925 = vmatpush.msrb.mxu1 %v3377_v28  ;;  %v1546_v21 = vadd.f32 %v1521_v25, %v3887_v47  ;;  %v2071_v25 = vld [vmem:[%s3762_s4 + $0x40] sm:$0xff]  ;;  %v3897_v47 = vld [vmem:[#allocation27_spill] sm:$0xff] }
 0x43a   :  { %2296 = vrcp.f32 %v3533_v55  ;;  %1945 = vmatpush.msrb.mxu2 %v3379_v13  ;;  %1965 = vmatpush.msrb.mxu3 %v3383_v44  ;;  %v1563_v19 = vand.u32 2147483648, %v3533_v55  ;;  %vm1557_vm15 = vweird.f32 %v3533_v55 }
 0x43b   :  { %2298 = vrcp.f32 %v3537_v14  ;;  %1926 = vmatpush.msrb.mxu1 %v3389_v46  ;;  %v1582_v46 = vand.u32 2147483648, %v3537_v14  ;;  %vm1576_vm0 = vweird.f32 %v3537_v14 }
 0x43c   :  { %1946 = vmatpush.msrb.mxu2 %v3391_v17  ;;  %1966 = vmatpush.msrb.mxu3 %v3395_v27  ;;  %v1561_v27 = vand.u32 2147483647, %v3533_v55  ;;  %v1564_v36 = vor.u32 1.1754944e-38, %v1563_v19 }
 0x43d   :  { %1927 = vmatpush.msrb.mxu1 %v3401_v35  ;;  %v1580_v35 = vand.u32 2147483647, %v3537_v14 }
 0x43e   :  { %v2295_v50 = vpop.eup %2294  ;;  %1947 = vmatpush.msrb.mxu2 %v3403_v5  ;;  %1967 = vmatpush.msrb.mxu3 %v3407_v33  ;;  %vm1562_vm3 = vcmp.eq.f32.partialorder %v1561_v27, 8.507059e+37  ;;  %v2065_v27 = vld [vmem:[%s3762_s4 + $0x10] sm:$0xff] }
 0x43f   :  { %v3553_v22 = vadd.f32 1.0, %v2295_v50  ;;  %1928 = vmatpush.msrb.mxu1 %v3413_v1  ;;  %vm1581_vm4 = vcmp.eq.f32.partialorder %v1580_v35, 8.507059e+37  ;;  %v2070_v50 = vld [vmem:[%s3762_s4 + $0x38] sm:$0xff] }
 0x440   :  { %v2297_v10 = vpop.eup %2296  ;;  %1948 = vmatpush.msrb.mxu2 %v3415_v29  ;;  %1968 = vmatpush.msrb.mxu3 %v3419_v2  ;;  %v1583_v2 = vor.u32 1.1754944e-38, %v1582_v46 }
 0x441   :  { %v2299_v24 = vpop.eup %2298  ;;  %v1553_v26 = vmul.f32 %v2297_v10, %v3533_v55  ;;  %2300 = vrcp.f32 %v3553_v22  ;;  %vm1558_vm13 = vweird.f32 %v2297_v10  ;;  %1929 = vmatpush.msrb.mxu1 %v3425_v52  ;;  %v1602_v54 = vand.u32 2147483648, %v3553_v22 }
 0x442   :  { %v1572_v28 = vmul.f32 %v2299_v24, %v3537_v14  ;;  %2302 = vtanh.f32 %v1546_v21  ;;  %vm1577_vm14 = vweird.f32 %v2299_v24  ;;  %1949 = vmatpush.msrb.mxu2 %v3427_v53  ;;  %1969 = vmatpush.msrb.mxu3 %v3431_v62  ;;  %vm1559_vm1 = vmor %vm1557_vm15, %vm1558_vm13  ;;  %vm1596_vm6 = vweird.f32 %v3553_v22 }
 0x443   :  { %v1554_v13 = vsub.f32 1.0, %v1553_v26  ;;  %1930 = vmatpush.msrb.mxu1 %v3435_v60  ;;  %vm1578_vm2 = vmor %vm1576_vm0, %vm1577_vm14 }
 0x444   :  { %v1573_v44 = vsub.f32 1.0, %v1572_v28  ;;  %1950 = vmatpush.msrb.mxu2 %v3437_v0  ;;  %1970 = vmatpush.msrb.mxu3 %v3439_v32  ;;  %v2067_v28 = vld [vmem:[%s3762_s4 + $0x20] sm:$0xff] }
 0x445   :  { %v1555_v17 = vmul.f32 %v2297_v10, %v1554_v13  ;;  %1931 = vmatpush.msrb.mxu1 %v3445_v41 }
 0x446   :  { %v1574_v57 = vmul.f32 %v2299_v24, %v1573_v44  ;;  %1951 = vmatpush.msrb.mxu2 %v3447_v43  ;;  %1971 = vmatpush.msrb.mxu3 %v3449_v38  ;;  %v3888_v43 = vld [vmem:[#allocation47_spill] sm:$0xff]  ;;  %v3889_v38 = vld [vmem:[#allocation32_spill] sm:$0xff] }
 0x447   :  { %v3579_v5 = vpop.eup %2300  ;;  %v1556_v33 = vadd.f32 %v2297_v10, %v1555_v17  ;;  %1932 = vmatpush.msrb.mxu1 %v3455_v39  ;;  %1916 = vmatpush.msrb.mxu0 %v3888_v43  ;;  %v1603_v39 = vor.u32 1.1754944e-38, %v1602_v54  ;;  %v2066_v17 = vld [vmem:[%s3762_s4 + $0x18] sm:$0xff] }
 0x448   :  { %v1575_v1 = vadd.f32 %v2299_v24, %v1574_v57  ;;  %v1592_v29 = vmul.f32 %v3579_v5, %v3553_v22  ;;  %v2303_v37 = vpop.eup %2302  ;;  %1952 = vmatpush.msrb.mxu2 %v3457_v56  ;;  %1972 = vmatpush.msrb.mxu3 %v3459_v6  ;;  %vm1597_vm5 = vweird.f32 %v3579_v5  ;;  %v3890_v56 = vld [vmem:[#allocation50_spill] sm:$0xff] }
 0x449   :  { %v1560_v59 = vsel %vm1559_vm1, %v2297_v10, %v1556_v33  ;;  %1933 = vmatpush.msrb.mxu1 %v3467_v31  ;;  %vm1598_vm7 = vmor %vm1596_vm6, %vm1597_vm5  ;;  %v3891_v6 = vld [vmem:[#allocation34_spill] sm:$0xff]  ;;  %1917 = vmatpush.msrb.mxu0 %v3892_v12  ;;  %v3893_v31 = vld [vmem:[#allocation35_spill] sm:$0xff]  ;;  %vm2124_vm5 = vcmask 64512  }
 0x44a   :  { %v1565_v52 = vsel %vm1562_vm3, %v1564_v36, %v1560_v59  ;;  %v1579_v53 = vsel %vm1578_vm2, %v2299_v24, %v1575_v1  ;;  %v1593_v62 = vsub.f32 1.0, %v1592_v29  ;;  %1953 = vmatpush.msrb.mxu2 %v3469_v42  ;;  %1973 = vmatpush.msrb.mxu3 %v3471_v18  ;;  %v2068_v24 = vld [vmem:[%s3762_s4 + $0x28] sm:$0xff]  ;;  %v2063_v33 = vld [vmem:[%s3762_s4] sm:$0xff]  ;;  %v3898_v29 = vld [vmem:[#allocation19_spill] sm:$0xff] }
 0x44b   :  { %v1584_v60 = vsel %vm1581_vm4, %v1583_v2, %v1579_v53  ;;  %v1607_v0 = vmul.f32 %v2303_v37, %v1565_v52  ;;  %1934 = vmatpush.msrb.mxu1 %v3478_v45  ;;  %1918 = vmatpush.msrb.mxu0 %v3345_v15  ;;  %v2076_v15 = vld [vmem:[%s3762_s4 + $0x68] sm:$0xff] }
 0x44c   :  { %v1606_v32 = vmul.f32 %v1584_v60, %v3354_v30  ;;  %v1594_v3 = vmul.f32 %v3579_v5, %v1593_v62  ;;  %1954 = vmatpush.msrb.mxu2 %v3480_v48  ;;  %1974 = vmatpush.msrb.mxu3 %v3482_v51  ;;  %v1600_v30 = vand.u32 2147483647, %v3553_v22  ;;  %v3895_v48 = vld [vmem:[#allocation11_spill] sm:$0xff]  ;;  %v2064_v57 = vld [vmem:[%s3762_s4 + $0x8] sm:$0xff] }
 0x44d   :  { %1935 = vmatpush.msrb.mxu1 %v3488_v8  ;;  %1919 = vmatpush.msrb.mxu0 %v3348_v34  ;;  %v2075_v34 = vld [vmem:[%s3762_s4 + $0x60] sm:$0xff]  ;;  %v2069_v22 = vld [vmem:[%s3762_s4 + $0x30] sm:$0xff] }
 0x44e   :  { %v3603_v41 = vadd.f32 %v1607_v0, %v1606_v32  ;;  %v1595_v7 = vadd.f32 %v3579_v5, %v1594_v3  ;;  %1955 = vmatpush.msrb.mxu2 %v3490_v49  ;;  %1975 = vmatpush.msrb.mxu3 %v3492_v9  ;;  %vm1601_vm8 = vcmp.eq.f32.partialorder %v1600_v30, 8.507059e+37  ;;  %v2073_v9 = vld [vmem:[%s3762_s4 + $0x50] sm:$0xff] }
 0x44f   :  { %1936 = vmatpush.msrb.mxu1 %v3889_v38 }
 0x450   :  { %2304 = vtanh.f32 %v3603_v41  ;;  %v1599_v16 = vsel %vm1598_vm7, %v3579_v5, %v1595_v7  ;;  %1956 = vmatpush.msrb.mxu2 %v3890_v56  ;;  %1976 = vmatpush.msrb.mxu3 %v3891_v6 }
 0x451   :  { %1937 = vmatpush.msrb.mxu1 %v3893_v31  ;;  %v1604_v18 = vsel %vm1601_vm8, %v1603_v39, %v1599_v16 }
 0x452   :  { %1957 = vmatpush.msrb.mxu2 %v3508_v61  ;;  %1977 = vmatpush.msrb.mxu3 %v3510_v40  ;;  %v3894_v40 = vld [vmem:[#allocation25_spill] sm:$0xff] }
 0x453   :  { %1938 = vmatpush.msrb.mxu1 %v3515_v63  ;;  %v132_v51 = vadd.f32 %v3895_v48, %v3894_v40  ;;  %v2072_v63 = vld [vmem:[%s3762_s4 + $0x48] sm:$0xff] }
 0x454   :  { %1958 = vmatpush.msrb.mxu2 %v3519_v23  ;;  %1978 = vmatpush.msrb.mxu3 %v3521_v58  ;;  %v2078_v23 = vld [vmem:[%s3762_s4 + $0x78] sm:$0xff]  ;;  %v2077_v58 = vld [vmem:[%s3762_s4 + $0x70] sm:$0xff] }
 0x455   :  { %1939 = vmatpush.msrb.mxu1 %v3525_v20 }
 0x456   :  { %v2305_v42 = vpop.eup %2304  ;;  %1959 = vmatpush.msrb.mxu2 %v3529_v4  ;;  %1979 = vmatpush.msrb.mxu3 %v3531_v11  ;;  %v2074_v11 = vld [vmem:[%s3762_s4 + $0x58] sm:$0xff]  ;;  %v3896_v4 = vld [vmem:[#allocation21_spill] sm:$0xff] }
 0x457   :  { %v3630_v45 = vmul.f32 %v2305_v42, %v1604_v18 }
 0x459   :  { %1700 = vmatmul.f32.vlgmr.msra.gmra.mxu0 %v3630_v45  ;;  %1720 = vmatmul.f32.vlgmr.msra.gmra.mxu1 %v3630_v45 }
 0x45a   :  { %1740 = vmatmul.f32.vlgmr.msra.gmra.mxu2 %v3630_v45  ;;  %1760 = vmatmul.f32.vlgmr.msra.gmra.mxu3 %v3630_v45 }
 0x45b   :  { %2083 = vmatpush.msra.mxu0 %v2078_v23 }
 0x45d   :  { %2084 = vmatpush.msra.mxu0 %v2077_v58 }
 0x45f   :  { %2085 = vmatpush.msra.mxu0 %v2076_v15 }
 0x461   :  { %2086 = vmatpush.msra.mxu0 %v2075_v34 }
 0x463   :  { %2087 = vmatpush.msra.mxu0 %v2074_v11 }
 0x465   :  { %2088 = vmatpush.msra.mxu0 %v2073_v9 }
 0x467   :  { %2089 = vmatpush.msra.mxu0 %v2072_v63  ;;  %v3900_v63 = vld [vmem:[#allocation33_spill] sm:$0xff] }
 0x469   :  { %2090 = vmatpush.msra.mxu0 %v2071_v25  ;;  %v3903_v25 = vld [vmem:[#allocation49_spill] sm:$0xff] }
 0x46b   :  { %2091 = vmatpush.msra.mxu0 %v2070_v50  ;;  %v3904_v50 = vld [vmem:[#allocation12_spill] sm:$0xff] }
 0x46d   :  { %2092 = vmatpush.msra.mxu0 %v2069_v22  ;;  %v135_v22 = vadd.f32 %v3904_v50, %v3894_v40 }
 0x46f   :  { %2093 = vmatpush.msra.mxu0 %v2068_v24  ;;  %v3905_v24 = vld [vmem:[#allocation24_spill] sm:$0xff] }
 0x471   :  { %2094 = vmatpush.msra.mxu0 %v2067_v28 }
 0x473   :  { %2095 = vmatpush.msra.mxu0 %v2066_v17 }
 0x475   :  { %2096 = vmatpush.msra.mxu0 %v2065_v27 }
 0x477   :  { %2097 = vmatpush.msra.mxu0 %v2064_v57 }
 0x479   :  { %2098 = vmatpush.msra.mxu0 %v2063_v33 }
 0x4d6   :  { %v1701_v8 = vpop.f32.mrf.mxu0  ;;  %v1721_v49 = vpop.f32.mrf.mxu1 }
 0x4d7   :  { %v1764_v55 = vadd.f32 %v1701_v8, %v132_v51  ;;  %v1765_v61 = vadd.f32 %v1721_v49, %v3896_v4 }
 0x4d9   :  { %v2195_v20 = vmul.f32 -1.442695, %v1764_v55  ;;  %v2196_v14 = vmul.f32 -1.442695, %v1765_v61 }
 0x4db   :  { %2306 = vpow2.f32 %v2195_v20  ;;  %v3901_v20 = vld [vmem:[#allocation46_spill] sm:$0xff] }
 0x4dc   :  { %2308 = vpow2.f32 %v2196_v14  ;;  %v3902_v14 = vld [vmem:[#allocation31_spill] sm:$0xff] }
 0x4dd   :  { %v1761_v10 = vpop.f32.mrf.mxu3  ;;  %v1741_v35 = vpop.f32.mrf.mxu2 }
 0x4de   :  { %v1767_v21 = vadd.f32 %v1761_v10, %v3897_v47  ;;  %v1766_v2 = vadd.f32 %v1741_v35, %v3898_v29 }
 0x4e0   :  { %v2197_v26 = vmul.f32 -1.442695, %v1767_v21 }
 0x4e1   :  { %v2307_v13 = vpop.eup %2306 }
 0x4e2   :  { %v2309_v44 = vpop.eup %2308  ;;  %v1771_v19 = vadd.f32 1.0, %v2307_v13  ;;  %2310 = vpow2.f32 %v2197_v26 }
 0x4e3   :  { %v1790_v46 = vadd.f32 1.0, %v2309_v44  ;;  %v3713_v44 = vld [vmem:[%s3763_s5] ss:$0 sm:$0xff] }
 0x4e4   :  { %2312 = vrcp.f32 %v1771_v19  ;;  %v1783_v60 = vand.u32 2147483648, %v1771_v19  ;;  %v1781_v3 = vand.u32 2147483647, %v1771_v19  ;;  %vm1777_vm11 = vweird.f32 %v1771_v19 }
 0x4e5   :  { %2314 = vrcp.f32 %v1790_v46  ;;  %v1802_v0 = vand.u32 2147483648, %v1790_v46  ;;  %v1800_v54 = vand.u32 2147483647, %v1790_v46  ;;  %vm1796_vm12 = vweird.f32 %v1790_v46 }
 0x4e6   :  { %v1784_v43 = vor.u32 1.1754944e-38, %v1783_v60  ;;  %vm1782_vm15 = vcmp.eq.f32.partialorder %v1781_v3, 8.507059e+37 }
 0x4e7   :  { %v1803_v56 = vor.u32 1.1754944e-38, %v1802_v0  ;;  %vm1801_vm0 = vcmp.eq.f32.partialorder %v1800_v54, 8.507059e+37 }
 0x4e8   :  { %v2311_v5 = vpop.eup %2310 }
 0x4e9   :  { %v1810_v36 = vadd.f32 1.0, %v2311_v5 }
 0x4ea   :  { %v2313_v1 = vpop.eup %2312 }
 0x4eb   :  { %v2315_v59 = vpop.eup %2314  ;;  %v1773_v37 = vmul.f32 %v2313_v1, %v1771_v19  ;;  %2316 = vrcp.f32 %v1810_v36  ;;  %vm1778_vm9 = vweird.f32 %v2313_v1  ;;  %v1822_v51 = vand.u32 2147483648, %v1810_v36 }
 0x4ec   :  { %v1792_v52 = vmul.f32 %v2315_v59, %v1790_v46  ;;  %2318 = vtanh.f32 %v1766_v2  ;;  %vm1797_vm10 = vweird.f32 %v2315_v59  ;;  %vm1779_vm13 = vmor %vm1777_vm11, %vm1778_vm9  ;;  %vm1816_vm2 = vweird.f32 %v1810_v36 }
 0x4ed   :  { %v1774_v53 = vsub.f32 1.0, %v1773_v37  ;;  %vm1798_vm14 = vmor %vm1796_vm12, %vm1797_vm10  ;;  %v1820_v8 = vand.u32 2147483647, %v1810_v36  ;;  %v1823_v9 = vor.u32 1.1754944e-38, %v1822_v51 }
 0x4ee   :  { %v1793_v62 = vsub.f32 1.0, %v1792_v52  ;;  %v3907_v52 = vld [vmem:[#allocation22_spill] sm:$0xff] }
 0x4ef   :  { %v1775_v32 = vmul.f32 %v2313_v1, %v1774_v53  ;;  %vm1821_vm4 = vcmp.eq.f32.partialorder %v1820_v8, 8.507059e+37 }
 0x4f0   :  { %v1794_v7 = vmul.f32 %v2315_v59, %v1793_v62 }
 0x4f1   :  { %v2317_v30 = vpop.eup %2316  ;;  %v1776_v16 = vadd.f32 %v2313_v1, %v1775_v32 }
 0x4f2   :  { %v1795_v38 = vadd.f32 %v2315_v59, %v1794_v7  ;;  %v1812_v39 = vmul.f32 %v2317_v30, %v1810_v36  ;;  %v2319_v12 = vpop.eup %2318  ;;  %vm1817_vm1 = vweird.f32 %v2317_v30 }
 0x4f3   :  { %v1780_v6 = vsel %vm1779_vm13, %v2313_v1, %v1776_v16  ;;  %vm1818_vm3 = vmor %vm1816_vm2, %vm1817_vm1 }
 0x4f4   :  { %v1785_v31 = vsel %vm1782_vm15, %v1784_v43, %v1780_v6  ;;  %v1799_v42 = vsel %vm1798_vm14, %v2315_v59, %v1795_v38  ;;  %v1813_v18 = vsub.f32 1.0, %v1812_v39 }
 0x4f5   :  { %v1804_v23 = vsel %vm1801_vm0, %v1803_v56, %v1799_v42  ;;  %v1827_v58 = vmul.f32 %v2319_v12, %v1785_v31 }
 0x4f6   :  { %v1826_v15 = vmul.f32 %v1804_v23, %v3603_v41  ;;  %v1814_v34 = vmul.f32 %v2317_v30, %v1813_v18  ;;  %v3899_v41 = vld [vmem:[#allocation29_spill] sm:$0xff] }
 0x4f8   :  { %v3698_v11 = vadd.f32 %v1827_v58, %v1826_v15  ;;  %v1815_v48 = vadd.f32 %v2317_v30, %v1814_v34 }
 0x4fa   :  { %2320 = vtanh.f32 %v3698_v11  ;;  %v1819_v49 = vsel %vm1818_vm3, %v2317_v30, %v1815_v48 }
 0x4fb   :  { %v1824_v4 = vsel %vm1821_vm4, %v1823_v9, %v1819_v49 }
 0x500   :  { %v2321_v55 = vpop.eup %2320 }
 0x501   :  { %v1830_v61 = vmul.f32 %v2321_v55, %v1824_v4 }
 0x503   :  { %1920 = vmatmul.f32.vlgmr.msrb.gmra.mxu0 %v1830_v61  ;;  %1940 = vmatmul.f32.vlgmr.msrb.gmra.mxu1 %v1830_v61 }
 0x504   :  { %1960 = vmatmul.f32.vlgmr.msrb.gmra.mxu2 %v1830_v61  ;;  %1980 = vmatmul.f32.vlgmr.msrb.gmra.mxu3 %v1830_v61 }
 0x50b   :  { %2099 = vmatmul.f32.vlgmr.msra.gmra.mxu0 %v3899_v41 }
 0x513   :  { %2102 = vmatmul.f32.gmra.mxu0 %v3900_v63 }
 0x51b   :  { %2105 = vmatmul.f32.gmra.mxu0 %v3901_v20 }
 0x523   :  { %2108 = vmatmul.f32.gmra.mxu0 %v3902_v14 }
 0x52b   :  { %2111 = vmatmul.f32.gmra.mxu0 %v3903_v25 }
 0x533   :  { %2114 = vmatmul.f32.gmra.mxu0 %v3630_v45  ;;  %v3906_v45 = vld [vmem:[#allocation28_spill] sm:$0xff] }
 0x53b   :  { %2117 = vmatmul.f32.gmra.mxu0 %v1830_v61 }
 0x580   :  { %v1921_v10 = vpop.f32.mrf.mxu0  ;;  %v1941_v47 = vpop.f32.mrf.mxu1 }
 0x581   :  { %v1984_v21 = vadd.f32 %v1921_v10, %v135_v22  ;;  %v1985_v26 = vadd.f32 %v1941_v47, %v3905_v24 }
 0x583   :  { %v2198_v28 = vmul.f32 -1.442695, %v1984_v21  ;;  %v2199_v13 = vmul.f32 -1.442695, %v1985_v26 }
 0x585   :  { %2322 = vpow2.f32 %v2198_v28 }
 0x586   :  { %2324 = vpow2.f32 %v2199_v13 }
 0x587   :  { %v1981_v19 = vpop.f32.mrf.mxu3  ;;  %v1961_v1 = vpop.f32.mrf.mxu2 }
 0x588   :  { %v1987_v46 = vadd.f32 %v1981_v19, %v3906_v45  ;;  %v2100_v17 = vpop.f32.mrf.mxu0  ;;  %v1986_v53 = vadd.f32 %v1961_v1, %v3907_v52 }
 0x589   :  { %v2101_v40 = vadd.f32 %v3713_v44, %v2100_v17 }
 0x58a   :  { %v2200_v27 = vmul.f32 -1.442695, %v1987_v46 }
 0x58b   :  { %v2323_v57 = vpop.eup %2322  ;;  %2125 = vst.msk [vmem:[%s3764_s6] sm:$0xff] %vm2124_vm5, %v2101_v40 }
 0x58c   :  { %v2325_v35 = vpop.eup %2324  ;;  %v1991_v5 = vadd.f32 1.0, %v2323_v57  ;;  %2326 = vpow2.f32 %v2200_v27 }
 0x58d   :  { %v2010_v33 = vadd.f32 1.0, %v2325_v35 }
 0x58e   :  { %2328 = vrcp.f32 %v1991_v5  ;;  %v2001_v7 = vand.u32 2147483647, %v1991_v5  ;;  %v2003_v54 = vand.u32 2147483648, %v1991_v5  ;;  %vm1997_vm8 = vweird.f32 %v1991_v5 }
 0x58f   :  { %2330 = vrcp.f32 %v2010_v33  ;;  %v2022_v16 = vand.u32 2147483648, %v2010_v33  ;;  %v2020_v56 = vand.u32 2147483647, %v2010_v33  ;;  %vm2016_vm9 = vweird.f32 %v2010_v33 }
 0x590   :  { %v2103_v36 = vpop.f32.mrf.mxu0  ;;  %v2004_v31 = vor.u32 1.1754944e-38, %v2003_v54  ;;  %vm2002_vm11 = vcmp.eq.f32.partialorder %v2001_v7, 8.507059e+37 }
 0x591   :  { %v2104_v29 = vadd.f32 %v3713_v44, %v2103_v36  ;;  %v2023_v23 = vor.u32 1.1754944e-38, %v2022_v16  ;;  %vm2021_vm13 = vcmp.eq.f32.partialorder %v2020_v56, 8.507059e+37 }
 0x592   :  { %v2327_v2 = vpop.eup %2326 }
 0x593   :  { %v2030_v59 = vadd.f32 1.0, %v2327_v2  ;;  %2126 = vst.msk [vmem:[%s3764_s6 + $0x8] sm:$0xff] %vm2124_vm5, %v2104_v29 }
 0x594   :  { %v2329_v37 = vpop.eup %2328 }
 0x595   :  { %v2331_v62 = vpop.eup %2330  ;;  %v1993_v60 = vmul.f32 %v2329_v37, %v1991_v5  ;;  %2332 = vrcp.f32 %v2030_v59  ;;  %vm1998_vm6 = vweird.f32 %v2329_v37  ;;  %v2042_v20 = vand.u32 2147483648, %v2030_v59 }
 0x596   :  { %v2012_v0 = vmul.f32 %v2331_v62, %v2010_v33  ;;  %2334 = vtanh.f32 %v1986_v53  ;;  %vm2017_vm7 = vweird.f32 %v2331_v62  ;;  %vm1999_vm10 = vmor %vm1997_vm8, %vm1998_vm6  ;;  %vm2036_vm15 = vweird.f32 %v2030_v59 }
 0x597   :  { %v1994_v32 = vsub.f32 1.0, %v1993_v60  ;;  %vm2018_vm12 = vmor %vm2016_vm9, %vm2017_vm7  ;;  %v2040_v14 = vand.u32 2147483647, %v2030_v59  ;;  %v2043_v22 = vor.u32 1.1754944e-38, %v2042_v20 }
 0x598   :  { %v2013_v3 = vsub.f32 1.0, %v2012_v0  ;;  %v2106_v30 = vpop.f32.mrf.mxu0 }
 0x599   :  { %v1995_v43 = vmul.f32 %v2329_v37, %v1994_v32  ;;  %v2107_v38 = vadd.f32 %v3713_v44, %v2106_v30  ;;  %vm2041_vm1 = vcmp.eq.f32.partialorder %v2040_v14, 8.507059e+37 }
 0x59a   :  { %v2014_v39 = vmul.f32 %v2331_v62, %v2013_v3 }
 0x59b   :  { %v2333_v6 = vpop.eup %2332  ;;  %v1996_v12 = vadd.f32 %v2329_v37, %v1995_v43  ;;  %2127 = vst.msk [vmem:[%s3764_s6 + $0x10] sm:$0xff] %vm2124_vm5, %v2107_v38 }
 0x59c   :  { %v2015_v42 = vadd.f32 %v2331_v62, %v2014_v39  ;;  %v2032_v18 = vmul.f32 %v2333_v6, %v2030_v59  ;;  %v2335_v15 = vpop.eup %2334  ;;  %vm2037_vm14 = vweird.f32 %v2333_v6 }
 0x59d   :  { %v2000_v58 = vsel %vm1999_vm10, %v2329_v37, %v1996_v12  ;;  %vm2038_vm0 = vmor %vm2036_vm15, %vm2037_vm14 }
 0x59e   :  { %v2005_v34 = vsel %vm2002_vm11, %v2004_v31, %v2000_v58  ;;  %v2019_v48 = vsel %vm2018_vm12, %v2331_v62, %v2015_v42  ;;  %v2033_v51 = vsub.f32 1.0, %v2032_v18 }
 0x59f   :  { %v2047_v8 = vmul.f32 %v2335_v15, %v2005_v34  ;;  %v2024_v49 = vsel %vm2021_vm13, %v2023_v23, %v2019_v48 }
 0x5a0   :  { %v2109_v9 = vpop.f32.mrf.mxu0  ;;  %v2034_v55 = vmul.f32 %v2333_v6, %v2033_v51  ;;  %v2046_v4 = vmul.f32 %v2024_v49, %v3698_v11 }
 0x5a1   :  { %v2110_v61 = vadd.f32 %v3713_v44, %v2109_v9 }
 0x5a2   :  { %v2048_v41 = vadd.f32 %v2047_v8, %v2046_v4  ;;  %v2035_v63 = vadd.f32 %v2333_v6, %v2034_v55 }
 0x5a3   :  { %2128 = vst.msk [vmem:[%s3764_s6 + $0x18] sm:$0xff] %vm2124_vm5, %v2110_v61 }
 0x5a4   :  { %2336 = vtanh.f32 %v2048_v41  ;;  %v2039_v25 = vsel %vm2038_vm0, %v2333_v6, %v2035_v63 }
 0x5a5   :  { %v2044_v47 = vsel %vm2041_vm1, %v2043_v22, %v2039_v25 }
 0x5a8   :  { %v2112_v50 = vpop.f32.mrf.mxu0 }
 0x5a9   :  { %v2113_v11 = vadd.f32 %v3713_v44, %v2112_v50 }
 0x5aa   :  { %v2337_v10 = vpop.eup %2336 }
 0x5ab   :  { %2129 = vst.msk [vmem:[%s3764_s6 + $0x20] sm:$0xff] %vm2124_vm5, %v2113_v11  ;;  %v2050_v21 = vmul.f32 %v2337_v10, %v2044_v47 }
 0x5ad   :  { %2120 = vmatmul.f32.gmra.mxu0 %v2050_v21 }
 0x5b0   :  { %v2115_v24 = vpop.f32.mrf.mxu0 }
 0x5b1   :  { %v2116_v26 = vadd.f32 %v3713_v44, %v2115_v24 }
 0x5b3   :  { %2130 = vst.msk [vmem:[%s3764_s6 + $0x28] sm:$0xff] %vm2124_vm5, %v2116_v26 }
 0x5b8   :  { %v2118_v28 = vpop.f32.mrf.mxu0 }
 0x5b9   :  { %v2119_v13 = vadd.f32 %v3713_v44, %v2118_v28 }
 0x5bb   :  { %2131 = vst.msk [vmem:[%s3764_s6 + $0x30] sm:$0xff] %vm2124_vm5, %v2119_v13 }
 0x62a   :  { %v2121_v19 = vpop.f32.mrf.mxu0 }
 0x62b   :  { %v2122_v45 = vadd.f32 %v3713_v44, %v2121_v19 }
 0x62d   :  { %2132 = vst.msk [vmem:[%s3764_s6 + $0x38] sm:$0xff] %vm2124_vm5, %v2122_v45 }
 0x62e   :  { %2137 = vsyncpa [#allocation7], 1 }

</bundles_post_ra>
